<compile_context>
chip_gen: v5e
topology: v5e:2x2
jax: 0.10.0
libtpu: 0.0.40
codegen_flags: <defaults>
</compile_context>

<pallas_src>
import jax
import jax.numpy as jnp
from jax.experimental import pallas as pl
from jax.experimental.pallas import tpu as pltpu  # noqa: F401  (kept for clarity)


# -------------------------- model hyper-parameters --------------------------
B = 2                      # batch
S = 8                      # frames per video
C = 3                      # image channels
H = W = 32                 # spatial
PT, PH, PW = 2, 16, 16     # 3-D "patch" size of the swin stand-in
T, HP, WP = S // PT, H // PH, W // PW
N_IMG = T * HP * WP        # == args.max_img_seq_length  (16)
PATCH_DIM = C * PT * PH * PW   # 1536
LATENT = 64                # swin.backbone.norm.normalized_shape[0]
HIDDEN = 32                # args.img_feature_dim == bert hidden size
L_TXT = 8                  # text tokens
VOCAB = 64
TOTAL = L_TXT + N_IMG      # multimodal sequence length (24)
FFN = 4 * HIDDEN           # 128
SENS_HID = 64
SENS_OUT = 2               # (speed, course) control signals
LANES = 128

# ---------------- packed bf16 weight-slab row offsets (all 8/16-aligned) ----
W_PATCH = 0                        # (PATCH_DIM, LATENT)
W_FC = W_PATCH + PATCH_DIM         # (LATENT, HIDDEN)
W_Q = W_FC + LATENT                # (HIDDEN, HIDDEN)
W_K = W_Q + HIDDEN
W_V = W_K + HIDDEN
W_O = W_V + HIDDEN
W_FFN1 = W_O + HIDDEN              # (HIDDEN, FFN)
W_FFN2 = W_FFN1 + HIDDEN           # (FFN, HIDDEN)
W_LM = W_FFN2 + FFN                # (HIDDEN, VOCAB)   (padded to 128 lanes)
W_S1 = W_LM + HIDDEN               # (HIDDEN, SENS_HID)
W_S2 = W_S1 + HIDDEN               # (SENS_HID, SENS_OUT) (padded to 128 lanes)
W_ROWS = W_S2 + SENS_HID           # 2016 rows x 128 lanes bf16

# ---------------- packed f32 param-slab row offsets --------------------------
P_PATCH_B, P_SWIN_G, P_SWIN_B, P_FC_B = 0, 1, 2, 3
P_EMB_G, P_EMB_B = 4, 5
P_BQ, P_BK, P_BV, P_BO = 6, 7, 8, 9
P_LN1_G, P_LN1_B = 10, 11
P_FFN_B1, P_FFN_B2 = 12, 13
P_LN2_G, P_LN2_B = 14, 15
P_LM_B, P_S_B1, P_S_B2 = 16, 17, 18
P_POS = 24                         # (B*TOTAL, HIDDEN)  pos-emb pre-tiled over batch
P_LEARN = P_POS + B * TOTAL        # (TOTAL, TOTAL)     raw learn_vid_att, padded
P_ROWS = P_LEARN + TOTAL           # 96 rows x 128 lanes f32

# ---------------- per-call f32 data-slab row offsets -------------------------
D_TXT = 0                          # (B*L_TXT, HIDDEN)  word+type embeddings
D_MASK = D_TXT + B * L_TXT         # (B*TOTAL, TOTAL)   base attention mask
D_ROWS = D_MASK + B * TOTAL        # 64 rows

# ---------------- packed output slab layout (24, 128) ------------------------
O_LOGITS = 0                       # rows [0,16)  cols [0,VOCAB)
O_SENSOR = B * L_TXT               # rows [16,18) cols [0,SENS_OUT)
O_SPARSE = O_SENSOR + B            # row 18, col 0
OUT_ROWS = 24


def _ln(x, g, b, eps):
    mu = jnp.mean(x, axis=-1, keepdims=True)
    var = jnp.mean((x - mu) ** 2, axis=-1, keepdims=True)
    return (x - mu) * jax.lax.rsqrt(var + eps) * g + b


# ------------------------------ fused kernel ---------------------------------
def _fused_forward_kernel(patches_ref, w_ref, p_ref, d_ref, out_ref):
    f32 = jnp.float32
    bf16 = jnp.bfloat16

    def w_(off, rows, cols=None):
        if cols is None:                      # full 128 lanes (zero-padded weight)
            return w_ref[off:off + rows, :]
        return w_ref[off:off + rows, 0:cols]

    def p_(off, cols=None, rows=1):
        if cols is None:
            return p_ref[off:off + rows, :]
        return p_ref[off:off + rows, 0:cols]

    # ---- video backbone stand-in: 3-D patch embed (bf16 MXU, f32 acc) + LN + fc ----
    # TODO(synk): the real VidSwinTransformer backbone is an external module;
    # this stand-in implements only its 3-D patch embedding + final LayerNorm.
    feats = jnp.dot(patches_ref[...], w_(W_PATCH, PATCH_DIM, LATENT),
                    preferred_element_type=f32) + p_(P_PATCH_B, LATENT)
    feats = _ln(feats, p_(P_SWIN_G, LATENT), p_(P_SWIN_B, LATENT), 1e-5)
    vid = jnp.dot(feats.astype(bf16), w_(W_FC, LATENT, HIDDEN),
                  preferred_element_type=f32) + p_(P_FC_B, HIDDEN)   # (B*N_IMG, HIDDEN)

    # ---- sensor prediction head: per-video mean pool + 2-layer MLP ----
    # TODO(synk): the real get_sensor_pred_model head is an external module.
    pooled = jnp.concatenate(
        [jnp.mean(vid[bi * N_IMG:(bi + 1) * N_IMG, :], axis=0, keepdims=True)
         for bi in range(B)], axis=0)                                 # (B, HIDDEN)
    sh = jnp.maximum(
        jnp.dot(pooled.astype(bf16), w_(W_S1, HIDDEN, SENS_HID),
                preferred_element_type=f32) + p_(P_S_B1, SENS_HID), 0.0)
    sens_pad = jnp.dot(sh.astype(bf16), w_(W_S2, SENS_HID),
                       preferred_element_type=f32) + p_(P_S_B2)      # (B, 128) lane-dense

    # ---- learned video-attention mask + sparsity loss (learn_mask_enabled) ----
    sig = jax.nn.sigmoid(p_(P_LEARN, TOTAL, rows=TOTAL))              # (TOTAL, TOTAL)
    rr = jax.lax.broadcasted_iota(jnp.int32, (TOTAL, TOTAL), 0)
    cc = jax.lax.broadcasted_iota(jnp.int32, (TOTAL, TOTAL), 1)
    in_vid = jnp.logical_and(rr >= L_TXT, cc >= L_TXT)
    vid_att = jnp.where(jnp.logical_and(in_vid, rr != cc), sig, 0.0)  # (1-diag)*sigmoid
    learn_att = (rr == cc).astype(f32) + vid_att                      # diag + video_attention
    sparsity = jnp.sum(jnp.abs(vid_att)) * (1.0 / (N_IMG * N_IMG))    # mean(|video_attention|)

    # ---- multimodal tokens: per batch [text ; video] + positions + emb LN ----
    txt = d_ref[D_TXT:D_TXT + B * L_TXT, 0:HIDDEN]                    # (B*L_TXT, HIDDEN)
    pieces = []
    for bi in range(B):
        pieces.append(txt[bi * L_TXT:(bi + 1) * L_TXT, :])
        pieces.append(vid[bi * N_IMG:(bi + 1) * N_IMG, :])
    tok = jnp.concatenate(pieces, axis=0) + p_(P_POS, HIDDEN, rows=B * TOTAL)
    hs = _ln(tok, p_(P_EMB_G, HIDDEN), p_(P_EMB_B, HIDDEN), 1e-12)    # (B*TOTAL, HIDDEN)

    # ---- encoder layer stand-in: Q/K/V (3 separate matmuls, no lane slicing) ----
    # TODO(synk): the real BertForImageCaptioning trans_encoder is an external
    # multi-layer module; this stand-in is a single BERT-style layer + LM head.
    hsb = hs.astype(bf16)
    q = jnp.dot(hsb, w_(W_Q, HIDDEN, HIDDEN), preferred_element_type=f32) + p_(P_BQ, HIDDEN)
    k = jnp.dot(hsb, w_(W_K, HIDDEN, HIDDEN), preferred_element_type=f32) + p_(P_BK, HIDDEN)
    v = jnp.dot(hsb, w_(W_V, HIDDEN, HIDDEN), preferred_element_type=f32) + p_(P_BV, HIDDEN)

    # ---- batched masked self-attention (one einsum per stage, all in vregs) ----
    q3 = q.reshape(B, TOTAL, HIDDEN).astype(bf16)
    k3 = k.reshape(B, TOTAL, HIDDEN).astype(bf16)
    v3 = v.reshape(B, TOTAL, HIDDEN).astype(bf16)
    s = jnp.einsum('btd,bsd->bts', q3, k3,
                   preferred_element_type=f32) * (1.0 / (HIDDEN ** 0.5))
    base = d_ref[D_MASK:D_MASK + B * TOTAL, 0:TOTAL].reshape(B, TOTAL, TOTAL)
    mask = jnp.where(jnp.broadcast_to(in_vid[None], (B, TOTAL, TOTAL)),
                     jnp.broadcast_to(learn_att[None], (B, TOTAL, TOTAL)),
                     base)
    s = s + (1.0 - mask) * (-10000.0)          # BERT extended-attention-mask scale
    s = s - jnp.max(s, axis=-1, keepdims=True)
    p = jnp.exp(s)
    p = p * pl.reciprocal(jnp.sum(p, axis=-1, keepdims=True), approx=True)
    ctx = jnp.einsum('bts,bsd->btd', p.astype(bf16), v3,
                     preferred_element_type=f32).reshape(B * TOTAL, HIDDEN)

    # ---- output projection + add&LN + FFN + add&LN ----
    attn_out = jnp.dot(ctx.astype(bf16), w_(W_O, HIDDEN, HIDDEN),
                       preferred_element_type=f32) + p_(P_BO, HIDDEN)
    h1 = _ln(attn_out + hs, p_(P_LN1_G, HIDDEN), p_(P_LN1_B, HIDDEN), 1e-12)
    # TODO(synk): PyTorch nn.GELU defaults to exact erf; tanh approximation used here.
    ff = jax.nn.gelu(jnp.dot(h1.astype(bf16), w_(W_FFN1, HIDDEN, FFN),
                             preferred_element_type=f32) + p_(P_FFN_B1, FFN))
    ff = jnp.dot(ff.astype(bf16), w_(W_FFN2, FFN, HIDDEN),
                 preferred_element_type=f32) + p_(P_FFN_B2, HIDDEN)
    h2 = _ln(ff + h1, p_(P_LN2_G, HIDDEN), p_(P_LN2_B, HIDDEN), 1e-12)

    # ---- LM head over the text rows ONLY (8-aligned sublane slices), lane-dense ----
    text_h = jnp.concatenate(
        [h2[bi * TOTAL:bi * TOTAL + L_TXT, :] for bi in range(B)], axis=0)  # (B*L_TXT, HIDDEN)
    logits_pad = jnp.dot(text_h.astype(bf16), w_(W_LM, HIDDEN),
                         preferred_element_type=f32) + p_(P_LM_B)           # (B*L_TXT, 128)

    # ---- single lane-dense packed output slab (one writeback DMA) ----
    out_ref[O_LOGITS:O_LOGITS + B * L_TXT, :] = logits_pad
    out_ref[O_SENSOR:O_SENSOR + B, :] = sens_pad
    out_ref[O_SPARSE:O_SPARSE + 1, :] = jnp.zeros((1, LANES), f32) + sparsity
    out_ref[O_SPARSE + 1:OUT_ROWS, :] = jnp.zeros((OUT_ROWS - O_SPARSE - 1, LANES), f32)


# ---------------------------- parameter init ---------------------------------
def init_params(key):
    def nrm(k, shape):
        return jax.random.normal(k, shape, jnp.float32) * 0.02

    ks = jax.random.split(key, 16)
    return {
        # swin backbone stand-in (patch embed + final norm)
        "patch_w": nrm(ks[0], (PATCH_DIM, LATENT)),
        "patch_b": jnp.zeros((LATENT,), jnp.float32),
        "swin_g": jnp.ones((LATENT,), jnp.float32),
        "swin_b": jnp.zeros((LATENT,), jnp.float32),
        # self.fc : latent -> img_feature_dim
        "fc_w": nrm(ks[1], (LATENT, HIDDEN)),
        "fc_b": jnp.zeros((HIDDEN,), jnp.float32),
        # self.learn_vid_att = nn.Embedding(L*L, 1)
        "learn_vid_att": nrm(ks[2], (N_IMG * N_IMG, 1)),
        # trans_encoder stand-in (single BERT-style layer)
        "word_emb": nrm(ks[3], (VOCAB, HIDDEN)),
        "type_emb": nrm(ks[4], (2, HIDDEN)),
        "pos_emb": nrm(ks[5], (TOTAL, HIDDEN)),
        "emb_ln_g": jnp.ones((HIDDEN,), jnp.float32),
        "emb_ln_b": jnp.zeros((HIDDEN,), jnp.float32),
        "wq": nrm(ks[6], (HIDDEN, HIDDEN)), "bq": jnp.zeros((HIDDEN,), jnp.float32),
        "wk": nrm(ks[7], (HIDDEN, HIDDEN)), "bk": jnp.zeros((HIDDEN,), jnp.float32),
        "wv": nrm(ks[8], (HIDDEN, HIDDEN)), "bv": jnp.zeros((HIDDEN,), jnp.float32),
        "wo": nrm(ks[9], (HIDDEN, HIDDEN)), "bo": jnp.zeros((HIDDEN,), jnp.float32),
        "ln1_g": jnp.ones((HIDDEN,), jnp.float32),
        "ln1_b": jnp.zeros((HIDDEN,), jnp.float32),
        "ffn_w1": nrm(ks[10], (HIDDEN, FFN)), "ffn_b1": jnp.zeros((FFN,), jnp.float32),
        "ffn_w2": nrm(ks[11], (FFN, HIDDEN)), "ffn_b2": jnp.zeros((HIDDEN,), jnp.float32),
        "ln2_g": jnp.ones((HIDDEN,), jnp.float32),
        "ln2_b": jnp.zeros((HIDDEN,), jnp.float32),
        "lm_w": nrm(ks[12], (HIDDEN, VOCAB)), "lm_b": jnp.zeros((VOCAB,), jnp.float32),
        # sensor prediction head stand-in
        "s_w1": nrm(ks[13], (HIDDEN, SENS_HID)), "s_b1": jnp.zeros((SENS_HID,), jnp.float32),
        "s_w2": nrm(ks[14], (SENS_HID, SENS_OUT)), "s_b2": jnp.zeros((SENS_OUT,), jnp.float32),
    }


# -------------------- one-time host-side parameter packing -------------------
def prepare_packed_params(p):
    """Pack all parameters into one bf16 weight slab + one f32 param slab."""
    def set2d(slab, off, x, dtype):
        x = jnp.asarray(x, dtype)
        if x.ndim == 1:
            x = x.reshape(1, -1)
        r, c = x.shape
        return slab.at[off:off + r, 0:c].set(x)

    wslab = jnp.zeros((W_ROWS, LANES), jnp.bfloat16)
    for off, name in ((W_PATCH, "patch_w"), (W_FC, "fc_w"), (W_Q, "wq"),
                      (W_K, "wk"), (W_V, "wv"), (W_O, "wo"),
                      (W_FFN1, "ffn_w1"), (W_FFN2, "ffn_w2"),
                      (W_LM, "lm_w"), (W_S1, "s_w1"), (W_S2, "s_w2")):
        wslab = set2d(wslab, off, p[name], jnp.bfloat16)

    pslab = jnp.zeros((P_ROWS, LANES), jnp.float32)
    for off, name in ((P_PATCH_B, "patch_b"), (P_SWIN_G, "swin_g"),
                      (P_SWIN_B, "swin_b"), (P_FC_B, "fc_b"),
                      (P_EMB_G, "emb_ln_g"), (P_EMB_B, "emb_ln_b"),
                      (P_BQ, "bq"), (P_BK, "bk"), (P_BV, "bv"), (P_BO, "bo"),
                      (P_LN1_G, "ln1_g"), (P_LN1_B, "ln1_b"),
                      (P_FFN_B1, "ffn_b1"), (P_FFN_B2, "ffn_b2"),
                      (P_LN2_G, "ln2_g"), (P_LN2_B, "ln2_b"),
                      (P_LM_B, "lm_b"), (P_S_B1, "s_b1"), (P_S_B2, "s_b2")):
        pslab = set2d(pslab, off, p[name], jnp.float32)
    # positional embeddings pre-tiled over the batch
    pslab = set2d(pslab, P_POS, jnp.tile(p["pos_emb"], (B, 1)), jnp.float32)
    # raw learn_vid_att weights embedded bottom-right of a (TOTAL, TOTAL) slab
    learn_pad = jnp.zeros((TOTAL, TOTAL), jnp.float32).at[L_TXT:, L_TXT:].set(
        p["learn_vid_att"].reshape(N_IMG, N_IMG))
    pslab = set2d(pslab, P_LEARN, learn_pad, jnp.float32)

    return {"wslab": wslab, "pslab": pslab,
            "word_emb": p["word_emb"], "type_emb": p["type_emb"]}


# ------------------------------- forward -------------------------------------
def multitask_forward(packed, input_ids, attention_mask, token_type_ids, img_feats):
    b, s, c, h, w = img_feats.shape

    # ---- 3-D patch extraction: permute(0,2,1,3,4) + patchify (layout only) ----
    x = jnp.transpose(img_feats, (0, 2, 1, 3, 4))                # (B,C,S,H,W)
    x = x.reshape(b, c, T, PT, HP, PH, WP, PW)
    x = jnp.transpose(x, (0, 2, 4, 6, 1, 3, 5, 7))
    patches = x.reshape(b * N_IMG, PATCH_DIM).astype(jnp.bfloat16)

    # ---- word/type embedding gather (XLA gather, outside the kernel) ----
    txt_emb = (jnp.take(packed["word_emb"], input_ids.reshape(-1), axis=0)
               + jnp.take(packed["type_emb"], token_type_ids.reshape(-1), axis=0))

    # ---- per-call data slab: text embeddings + base attention mask ----
    dslab = jnp.zeros((D_ROWS, LANES), jnp.float32)
    dslab = dslab.at[D_TXT:D_TXT + b * L_TXT, 0:HIDDEN].set(txt_emb)
    dslab = dslab.at[D_MASK:D_MASK + b * TOTAL, 0:TOTAL].set(
        attention_mask.astype(jnp.float32).reshape(b * TOTAL, TOTAL))

    out = pl.pallas_call(
        _fused_forward_kernel,
        out_shape=jax.ShapeDtypeStruct((OUT_ROWS, LANES), jnp.float32),
    )(patches, packed["wslab"], packed["pslab"], dslab)

    logits = out[O_LOGITS:O_LOGITS + b * L_TXT, 0:VOCAB].reshape(b, L_TXT, VOCAB)
    sensor = out[O_SENSOR:O_SENSOR + b, 0:SENS_OUT]
    loss_sparsity = out[O_SPARSE, 0]
    # outputs = trans_encoder_outputs + sensor_outputs + (loss_sparsity,)
    return (logits,) + (sensor,) + (loss_sparsity,)


# --------------------------------- main ---------------------------------------
if __name__ == "__main__":
    key = jax.random.PRNGKey(0)
    k_par, k_img, k_ids = jax.random.split(key, 3)

    params = init_params(k_par)
    packed = prepare_packed_params(params)       # one-time parameter packing

    img_feats = jax.random.normal(k_img, (B, S, C, H, W), jnp.float32)
    input_ids = jax.random.randint(k_ids, (B, L_TXT), 0, VOCAB, dtype=jnp.int32)
    token_type_ids = jnp.zeros((B, L_TXT), jnp.int32).at[:, L_TXT // 2:].set(1)
    attention_mask = jnp.ones((B, TOTAL, TOTAL), jnp.float32)

    fwd = jax.jit(multitask_forward)
    outputs = fwd(packed, input_ids, attention_mask, token_type_ids, img_feats)
    jax.block_until_ready(outputs)

    logits, sensor, loss_sparsity = outputs
    assert logits.shape == (B, L_TXT, VOCAB)
    assert sensor.shape == (B, SENS_OUT)
    assert loss_sparsity.shape == ()
    print("KERNEL_OK")
</pallas_src>

<mosaic_0001>
module attributes {stable_mosaic.version = 11 : i64} {
  func.func @_fused_forward_kernel(%arg0: memref<32x1536xbf16, #tpu.memory_space<vmem>>, %arg1: memref<2016x128xbf16, #tpu.memory_space<vmem>>, %arg2: memref<96x128xf32, #tpu.memory_space<vmem>>, %arg3: memref<64x128xf32, #tpu.memory_space<vmem>>, %arg4: memref<24x128xf32, #tpu.memory_space<vmem>>) attributes {dimension_semantics = [], scalar_prefetch = 0 : i64, scratch_operands = 0 : i64, tpu.core_type = #tpu.core_type<tc>} {
    %c0 = arith.constant 0 : index
    %c0_0 = arith.constant 0 : index
    %0 = vector.load %arg0[%c0, %c0_0] : memref<32x1536xbf16, #tpu.memory_space<vmem>>, vector<32x1536xbf16>
    %c0_1 = arith.constant 0 : index
    %c0_2 = arith.constant 0 : index
    %1 = vector.load %arg1[%c0_1, %c0_2] : memref<2016x128xbf16, #tpu.memory_space<vmem>>, vector<1536x64xbf16>
    %cst = arith.constant dense<0.000000e+00> : vector<32x64xf32>
    %2 = tpu.matmul %0, %1, %cst {dimension_numbers = #tpu.dot_dimension_numbers<[1], [0], [0], [1], [0, 0, 1, 1], [], []>} : vector<32x1536xbf16>, vector<1536x64xbf16>, vector<32x64xf32> -> vector<32x64xf32>
    %c0_3 = arith.constant 0 : index
    %c0_4 = arith.constant 0 : index
    %3 = vector.load %arg2[%c0_3, %c0_4] : memref<96x128xf32, #tpu.memory_space<vmem>>, vector<1x64xf32>
    %4 = vector.broadcast %3 : vector<1x64xf32> to vector<32x64xf32>
    %5 = arith.addf %2, %4 : vector<32x64xf32>
    %c1 = arith.constant 1 : index
    %c0_5 = arith.constant 0 : index
    %6 = vector.load %arg2[%c1, %c0_5] : memref<96x128xf32, #tpu.memory_space<vmem>>, vector<1x64xf32>
    %c2 = arith.constant 2 : index
    %c0_6 = arith.constant 0 : index
    %7 = vector.load %arg2[%c2, %c0_6] : memref<96x128xf32, #tpu.memory_space<vmem>>, vector<1x64xf32>
    %cst_7 = arith.constant dense<0.000000e+00> : vector<32xf32>
    %8 = vector.multi_reduction <add>, %5, %cst_7 [1] : vector<32x64xf32> to vector<32xf32>
    %9 = vector.shape_cast %8 : vector<32xf32> to vector<32x1xf32>
    %cst_8 = arith.constant 6.400000e+01 : f32
    %10 = vector.broadcast %cst_8 : f32 to vector<32x1xf32>
    %11 = arith.divf %9, %10 : vector<32x1xf32>
    %12 = vector.broadcast %11 : vector<32x1xf32> to vector<32x64xf32>
    %13 = arith.subf %5, %12 : vector<32x64xf32>
    %14 = arith.mulf %13, %13 : vector<32x64xf32>
    %cst_9 = arith.constant dense<0.000000e+00> : vector<32xf32>
    %15 = vector.multi_reduction <add>, %14, %cst_9 [1] : vector<32x64xf32> to vector<32xf32>
    %16 = vector.shape_cast %15 : vector<32xf32> to vector<32x1xf32>
    %cst_10 = arith.constant 6.400000e+01 : f32
    %17 = vector.broadcast %cst_10 : f32 to vector<32x1xf32>
    %18 = arith.divf %16, %17 : vector<32x1xf32>
    %19 = vector.broadcast %11 : vector<32x1xf32> to vector<32x64xf32>
    %20 = arith.subf %5, %19 : vector<32x64xf32>
    %cst_11 = arith.constant 9.99999974E-6 : f32
    %21 = vector.broadcast %cst_11 : f32 to vector<32x1xf32>
    %22 = arith.addf %18, %21 : vector<32x1xf32>
    %23 = math.rsqrt %22 : vector<32x1xf32>
    %24 = vector.broadcast %23 : vector<32x1xf32> to vector<32x64xf32>
    %25 = arith.mulf %20, %24 : vector<32x64xf32>
    %26 = vector.broadcast %6 : vector<1x64xf32> to vector<32x64xf32>
    %27 = arith.mulf %25, %26 : vector<32x64xf32>
    %28 = vector.broadcast %7 : vector<1x64xf32> to vector<32x64xf32>
    %29 = arith.addf %27, %28 : vector<32x64xf32>
    %30 = arith.truncf %29 : vector<32x64xf32> to vector<32x64xbf16>
    %c1536 = arith.constant 1536 : index
    %c0_12 = arith.constant 0 : index
    %31 = vector.load %arg1[%c1536, %c0_12] : memref<2016x128xbf16, #tpu.memory_space<vmem>>, vector<64x32xbf16>
    %cst_13 = arith.constant dense<0.000000e+00> : vector<32x32xf32>
    %32 = tpu.matmul %30, %31, %cst_13 {dimension_numbers = #tpu.dot_dimension_numbers<[1], [0], [0], [1], [0, 0, 1, 1], [], []>} : vector<32x64xbf16>, vector<64x32xbf16>, vector<32x32xf32> -> vector<32x32xf32>
    %c3 = arith.constant 3 : index
    %c0_14 = arith.constant 0 : index
    %33 = vector.load %arg2[%c3, %c0_14] : memref<96x128xf32, #tpu.memory_space<vmem>>, vector<1x32xf32>
    %34 = vector.broadcast %33 : vector<1x32xf32> to vector<32x32xf32>
    %35 = arith.addf %32, %34 : vector<32x32xf32>
    %36 = vector.extract_strided_slice %35 {offsets = [0, 0], sizes = [16, 32], strides = [1, 1]} : vector<32x32xf32> to vector<16x32xf32>
    %cst_15 = arith.constant dense<0.000000e+00> : vector<32xf32>
    %37 = vector.multi_reduction <add>, %36, %cst_15 [0] : vector<16x32xf32> to vector<32xf32>
    %38 = vector.shape_cast %37 : vector<32xf32> to vector<1x32xf32>
    %cst_16 = arith.constant 1.600000e+01 : f32
    %39 = vector.broadcast %cst_16 : f32 to vector<1x32xf32>
    %40 = arith.divf %38, %39 : vector<1x32xf32>
    %41 = vector.extract_strided_slice %35 {offsets = [16, 0], sizes = [16, 32], strides = [1, 1]} : vector<32x32xf32> to vector<16x32xf32>
    %cst_17 = arith.constant dense<0.000000e+00> : vector<32xf32>
    %42 = vector.multi_reduction <add>, %41, %cst_17 [0] : vector<16x32xf32> to vector<32xf32>
    %43 = vector.shape_cast %42 : vector<32xf32> to vector<1x32xf32>
    %cst_18 = arith.constant 1.600000e+01 : f32
    %44 = vector.broadcast %cst_18 : f32 to vector<1x32xf32>
    %45 = arith.divf %43, %44 : vector<1x32xf32>
    %46 = tpu.concatenate %40, %45 in 0 : vector<1x32xf32>, vector<1x32xf32> -> vector<2x32xf32>
    %47 = arith.truncf %46 : vector<2x32xf32> to vector<2x32xbf16>
    %c1920 = arith.constant 1920 : index
    %c0_19 = arith.constant 0 : index
    %48 = vector.load %arg1[%c1920, %c0_19] : memref<2016x128xbf16, #tpu.memory_space<vmem>>, vector<32x64xbf16>
    %cst_20 = arith.constant dense<0.000000e+00> : vector<2x64xf32>
    %49 = tpu.matmul %47, %48, %cst_20 {dimension_numbers = #tpu.dot_dimension_numbers<[1], [0], [0], [1], [0, 0, 1, 1], [], []>} : vector<2x32xbf16>, vector<32x64xbf16>, vector<2x64xf32> -> vector<2x64xf32>
    %c17 = arith.constant 17 : index
    %c0_21 = arith.constant 0 : index
    %50 = vector.load %arg2[%c17, %c0_21] : memref<96x128xf32, #tpu.memory_space<vmem>>, vector<1x64xf32>
    %51 = vector.broadcast %50 : vector<1x64xf32> to vector<2x64xf32>
    %52 = arith.addf %49, %51 : vector<2x64xf32>
    %cst_22 = arith.constant 0.000000e+00 : f32
    %53 = vector.broadcast %cst_22 : f32 to vector<2x64xf32>
    %54 = arith.maximumf %52, %53 : vector<2x64xf32>
    %55 = arith.truncf %54 : vector<2x64xf32> to vector<2x64xbf16>
    %c1952 = arith.constant 1952 : index
    %c0_23 = arith.constant 0 : index
    %56 = vector.load %arg1[%c1952, %c0_23] : memref<2016x128xbf16, #tpu.memory_space<vmem>>, vector<64x128xbf16>
    %cst_24 = arith.constant dense<0.000000e+00> : vector<2x128xf32>
    %57 = tpu.matmul %55, %56, %cst_24 {dimension_numbers = #tpu.dot_dimension_numbers<[1], [0], [0], [1], [0, 0, 1, 1], [], []>} : vector<2x64xbf16>, vector<64x128xbf16>, vector<2x128xf32> -> vector<2x128xf32>
    %c18 = arith.constant 18 : index
    %c0_25 = arith.constant 0 : index
    %58 = vector.load %arg2[%c18, %c0_25] : memref<96x128xf32, #tpu.memory_space<vmem>>, vector<1x128xf32>
    %59 = vector.broadcast %58 : vector<1x128xf32> to vector<2x128xf32>
    %60 = arith.addf %57, %59 : vector<2x128xf32>
    %c72 = arith.constant 72 : index
    %c0_26 = arith.constant 0 : index
    %61 = vector.load %arg2[%c72, %c0_26] : memref<96x128xf32, #tpu.memory_space<vmem>>, vector<24x24xf32>
    %62 = arith.negf %61 : vector<24x24xf32>
    %63 = math.exp %62 : vector<24x24xf32>
    %cst_27 = arith.constant 1.000000e+00 : f32
    %64 = vector.broadcast %cst_27 : f32 to vector<24x24xf32>
    %65 = arith.addf %64, %63 : vector<24x24xf32>
    %66 = arith.divf %64, %65 : vector<24x24xf32>
    %67 = tpu.iota {dimensions = array<i32: 0>} : vector<24x24xi32>
    %68 = tpu.iota {dimensions = array<i32: 1>} : vector<24x24xi32>
    %c8_i32 = arith.constant 8 : i32
    %69 = vector.broadcast %c8_i32 : i32 to vector<24x24xi32>
    %70 = arith.cmpi sge, %67, %69 : vector<24x24xi32>
    %c8_i32_28 = arith.constant 8 : i32
    %71 = vector.broadcast %c8_i32_28 : i32 to vector<24x24xi32>
    %72 = arith.cmpi sge, %68, %71 : vector<24x24xi32>
    %73 = arith.andi %70, %72 : vector<24x24xi1>
    %74 = arith.cmpi ne, %67, %68 : vector<24x24xi32>
    %75 = arith.andi %73, %74 : vector<24x24xi1>
    %cst_29 = arith.constant 0.000000e+00 : f32
    %76 = vector.broadcast %cst_29 : f32 to vector<24x24xf32>
    %77 = arith.select %75, %66, %76 : vector<24x24xi1>, vector<24x24xf32>
    %78 = arith.cmpi eq, %67, %68 : vector<24x24xi32>
    %79 = arith.extui %78 : vector<24x24xi1> to vector<24x24xi32>
    %80 = arith.sitofp %79 : vector<24x24xi32> to vector<24x24xf32>
    %81 = arith.addf %80, %77 : vector<24x24xf32>
    %82 = math.absf %77 : vector<24x24xf32>
    %83 = vector.shape_cast %82 : vector<24x24xf32> to vector<1x24x24xf32>
    %cst_30 = arith.constant dense<0.000000e+00> : vector<1xf32>
    %84 = vector.multi_reduction <add>, %83, %cst_30 [1, 2] : vector<1x24x24xf32> to vector<1xf32>
    %85 = vector.shape_cast %84 : vector<1xf32> to vector<1x1x1xf32>
    %86 = vector.extract %85[0, 0, 0] : f32 from vector<1x1x1xf32>
    %cst_31 = arith.constant 3.906250e-03 : f32
    %87 = arith.mulf %86, %cst_31 : f32
    %c0_32 = arith.constant 0 : index
    %c0_33 = arith.constant 0 : index
    %88 = vector.load %arg3[%c0_32, %c0_33] : memref<64x128xf32, #tpu.memory_space<vmem>>, vector<16x32xf32>
    %89 = vector.extract_strided_slice %88 {offsets = [0, 0], sizes = [8, 32], strides = [1, 1]} : vector<16x32xf32> to vector<8x32xf32>
    %90 = vector.extract_strided_slice %35 {offsets = [0, 0], sizes = [16, 32], strides = [1, 1]} : vector<32x32xf32> to vector<16x32xf32>
    %91 = vector.extract_strided_slice %88 {offsets = [8, 0], sizes = [8, 32], strides = [1, 1]} : vector<16x32xf32> to vector<8x32xf32>
    %92 = vector.extract_strided_slice %35 {offsets = [16, 0], sizes = [16, 32], strides = [1, 1]} : vector<32x32xf32> to vector<16x32xf32>
    %93 = tpu.concatenate %89, %90, %91, %92 in 0 : vector<8x32xf32>, vector<16x32xf32>, vector<8x32xf32>, vector<16x32xf32> -> vector<48x32xf32>
    %c24 = arith.constant 24 : index
    %c0_34 = arith.constant 0 : index
    %94 = vector.load %arg2[%c24, %c0_34] : memref<96x128xf32, #tpu.memory_space<vmem>>, vector<48x32xf32>
    %95 = arith.addf %93, %94 : vector<48x32xf32>
    %c4 = arith.constant 4 : index
    %c0_35 = arith.constant 0 : index
    %96 = vector.load %arg2[%c4, %c0_35] : memref<96x128xf32, #tpu.memory_space<vmem>>, vector<1x32xf32>
    %c5 = arith.constant 5 : index
    %c0_36 = arith.constant 0 : index
    %97 = vector.load %arg2[%c5, %c0_36] : memref<96x128xf32, #tpu.memory_space<vmem>>, vector<1x32xf32>
    %cst_37 = arith.constant dense<0.000000e+00> : vector<48xf32>
    %98 = vector.multi_reduction <add>, %95, %cst_37 [1] : vector<48x32xf32> to vector<48xf32>
    %99 = vector.shape_cast %98 : vector<48xf32> to vector<48x1xf32>
    %cst_38 = arith.constant 3.200000e+01 : f32
    %100 = vector.broadcast %cst_38 : f32 to vector<48x1xf32>
    %101 = arith.divf %99, %100 : vector<48x1xf32>
    %102 = vector.broadcast %101 : vector<48x1xf32> to vector<48x32xf32>
    %103 = arith.subf %95, %102 : vector<48x32xf32>
    %104 = arith.mulf %103, %103 : vector<48x32xf32>
    %cst_39 = arith.constant dense<0.000000e+00> : vector<48xf32>
    %105 = vector.multi_reduction <add>, %104, %cst_39 [1] : vector<48x32xf32> to vector<48xf32>
    %106 = vector.shape_cast %105 : vector<48xf32> to vector<48x1xf32>
    %cst_40 = arith.constant 3.200000e+01 : f32
    %107 = vector.broadcast %cst_40 : f32 to vector<48x1xf32>
    %108 = arith.divf %106, %107 : vector<48x1xf32>
    %109 = vector.broadcast %101 : vector<48x1xf32> to vector<48x32xf32>
    %110 = arith.subf %95, %109 : vector<48x32xf32>
    %cst_41 = arith.constant 9.99999996E-13 : f32
    %111 = vector.broadcast %cst_41 : f32 to vector<48x1xf32>
    %112 = arith.addf %108, %111 : vector<48x1xf32>
    %113 = math.rsqrt %112 : vector<48x1xf32>
    %114 = vector.broadcast %113 : vector<48x1xf32> to vector<48x32xf32>
    %115 = arith.mulf %110, %114 : vector<48x32xf32>
    %116 = vector.broadcast %96 : vector<1x32xf32> to vector<48x32xf32>
    %117 = arith.mulf %115, %116 : vector<48x32xf32>
    %118 = vector.broadcast %97 : vector<1x32xf32> to vector<48x32xf32>
    %119 = arith.addf %117, %118 : vector<48x32xf32>
    %120 = arith.truncf %119 : vector<48x32xf32> to vector<48x32xbf16>
    %c1600 = arith.constant 1600 : index
    %c0_42 = arith.constant 0 : index
    %121 = vector.load %arg1[%c1600, %c0_42] : memref<2016x128xbf16, #tpu.memory_space<vmem>>, vector<32x32xbf16>
    %cst_43 = arith.constant dense<0.000000e+00> : vector<48x32xf32>
    %122 = tpu.matmul %120, %121, %cst_43 {dimension_numbers = #tpu.dot_dimension_numbers<[1], [0], [0], [1], [0, 0, 1, 1], [], []>} : vector<48x32xbf16>, vector<32x32xbf16>, vector<48x32xf32> -> vector<48x32xf32>
    %c6 = arith.constant 6 : index
    %c0_44 = arith.constant 0 : index
    %123 = vector.load %arg2[%c6, %c0_44] : memref<96x128xf32, #tpu.memory_space<vmem>>, vector<1x32xf32>
    %124 = vector.broadcast %123 : vector<1x32xf32> to vector<48x32xf32>
    %125 = arith.addf %122, %124 : vector<48x32xf32>
    %c1632 = arith.constant 1632 : index
    %c0_45 = arith.constant 0 : index
    %126 = vector.load %arg1[%c1632, %c0_45] : memref<2016x128xbf16, #tpu.memory_space<vmem>>, vector<32x32xbf16>
    %cst_46 = arith.constant dense<0.000000e+00> : vector<48x32xf32>
    %127 = tpu.matmul %120, %126, %cst_46 {dimension_numbers = #tpu.dot_dimension_numbers<[1], [0], [0], [1], [0, 0, 1, 1], [], []>} : vector<48x32xbf16>, vector<32x32xbf16>, vector<48x32xf32> -> vector<48x32xf32>
    %c7 = arith.constant 7 : index
    %c0_47 = arith.constant 0 : index
    %128 = vector.load %arg2[%c7, %c0_47] : memref<96x128xf32, #tpu.memory_space<vmem>>, vector<1x32xf32>
    %129 = vector.broadcast %128 : vector<1x32xf32> to vector<48x32xf32>
    %130 = arith.addf %127, %129 : vector<48x32xf32>
    %c1664 = arith.constant 1664 : index
    %c0_48 = arith.constant 0 : index
    %131 = vector.load %arg1[%c1664, %c0_48] : memref<2016x128xbf16, #tpu.memory_space<vmem>>, vector<32x32xbf16>
    %cst_49 = arith.constant dense<0.000000e+00> : vector<48x32xf32>
    %132 = tpu.matmul %120, %131, %cst_49 {dimension_numbers = #tpu.dot_dimension_numbers<[1], [0], [0], [1], [0, 0, 1, 1], [], []>} : vector<48x32xbf16>, vector<32x32xbf16>, vector<48x32xf32> -> vector<48x32xf32>
    %c8 = arith.constant 8 : index
    %c0_50 = arith.constant 0 : index
    %133 = vector.load %arg2[%c8, %c0_50] : memref<96x128xf32, #tpu.memory_space<vmem>>, vector<1x32xf32>
    %134 = vector.broadcast %133 : vector<1x32xf32> to vector<48x32xf32>
    %135 = arith.addf %132, %134 : vector<48x32xf32>
    %136 = vector.shape_cast %125 : vector<48x32xf32> to vector<2x24x32xf32>
    %137 = arith.truncf %136 : vector<2x24x32xf32> to vector<2x24x32xbf16>
    %138 = vector.shape_cast %130 : vector<48x32xf32> to vector<2x24x32xf32>
    %139 = arith.truncf %138 : vector<2x24x32xf32> to vector<2x24x32xbf16>
    %140 = vector.shape_cast %135 : vector<48x32xf32> to vector<2x24x32xf32>
    %141 = arith.truncf %140 : vector<2x24x32xf32> to vector<2x24x32xbf16>
    "tpu.trace_start"() <{level = 10 : i32, message = "btd,bsd->bts"}> : () -> ()
    %cst_51 = arith.constant dense<0.000000e+00> : vector<2x24x24xf32>
    %142 = tpu.matmul %137, %139, %cst_51 {dimension_numbers = #tpu.dot_dimension_numbers<[2], [2], [1], [1], [0, 0, 0, 1, 1, 1], [0], [0]>} : vector<2x24x32xbf16>, vector<2x24x32xbf16>, vector<2x24x24xf32> -> vector<2x24x24xf32>
    "tpu.trace_stop"() : () -> ()
    %cst_52 = arith.constant 0.176776692 : f32
    %143 = vector.broadcast %cst_52 : f32 to vector<2x24x24xf32>
    %144 = arith.mulf %142, %143 : vector<2x24x24xf32>
    %c16 = arith.constant 16 : index
    %c0_53 = arith.constant 0 : index
    %145 = vector.load %arg3[%c16, %c0_53] : memref<64x128xf32, #tpu.memory_space<vmem>>, vector<48x24xf32>
    %146 = vector.shape_cast %145 : vector<48x24xf32> to vector<2x24x24xf32>
    %147 = vector.shape_cast %73 : vector<24x24xi1> to vector<1x24x24xi1>
    %148 = vector.shape_cast %147 : vector<1x24x24xi1> to vector<1x24x24xi1>
    %149 = vector.broadcast %148 : vector<1x24x24xi1> to vector<2x24x24xi1>
    %150 = vector.shape_cast %81 : vector<24x24xf32> to vector<1x24x24xf32>
    %151 = vector.shape_cast %150 : vector<1x24x24xf32> to vector<1x24x24xf32>
    %152 = vector.broadcast %151 : vector<1x24x24xf32> to vector<2x24x24xf32>
    %153 = arith.select %149, %152, %146 : vector<2x24x24xi1>, vector<2x24x24xf32>
    %cst_54 = arith.constant 1.000000e+00 : f32
    %154 = vector.broadcast %cst_54 : f32 to vector<2x24x24xf32>
    %155 = arith.subf %154, %153 : vector<2x24x24xf32>
    %cst_55 = arith.constant -1.000000e+04 : f32
    %156 = vector.broadcast %cst_55 : f32 to vector<2x24x24xf32>
    %157 = arith.mulf %155, %156 : vector<2x24x24xf32>
    %158 = arith.addf %144, %157 : vector<2x24x24xf32>
    %cst_56 = arith.constant dense<0xFF800000> : vector<2x24xf32>
    %159 = vector.multi_reduction <maximumf>, %158, %cst_56 [2] : vector<2x24x24xf32> to vector<2x24xf32>
    %160 = vector.shape_cast %159 : vector<2x24xf32> to vector<2x24x1xf32>
    %161 = vector.broadcast %160 : vector<2x24x1xf32> to vector<2x24x24xf32>
    %162 = arith.subf %158, %161 : vector<2x24x24xf32>
    %163 = math.exp %162 : vector<2x24x24xf32>
    %cst_57 = arith.constant dense<0.000000e+00> : vector<2x24xf32>
    %164 = vector.multi_reduction <add>, %163, %cst_57 [2] : vector<2x24x24xf32> to vector<2x24xf32>
    %165 = vector.shape_cast %164 : vector<2x24xf32> to vector<2x24x1xf32>
    %166 = tpu.reciprocal %165 {approx = true} : vector<2x24x1xf32> -> vector<2x24x1xf32>
    %167 = vector.broadcast %166 : vector<2x24x1xf32> to vector<2x24x24xf32>
    %168 = arith.mulf %163, %167 : vector<2x24x24xf32>
    %169 = arith.truncf %168 : vector<2x24x24xf32> to vector<2x24x24xbf16>
    "tpu.trace_start"() <{level = 10 : i32, message = "bts,bsd->btd"}> : () -> ()
    %cst_58 = arith.constant dense<0.000000e+00> : vector<2x24x32xf32>
    %170 = tpu.matmul %169, %141, %cst_58 {dimension_numbers = #tpu.dot_dimension_numbers<[2], [1], [1], [2], [0, 0, 0, 1, 1, 2], [0], [0]>} : vector<2x24x24xbf16>, vector<2x24x32xbf16>, vector<2x24x32xf32> -> vector<2x24x32xf32>
    "tpu.trace_stop"() : () -> ()
    %171 = vector.shape_cast %170 : vector<2x24x32xf32> to vector<48x32xf32>
    %172 = arith.truncf %171 : vector<48x32xf32> to vector<48x32xbf16>
    %c1696 = arith.constant 1696 : index
    %c0_59 = arith.constant 0 : index
    %173 = vector.load %arg1[%c1696, %c0_59] : memref<2016x128xbf16, #tpu.memory_space<vmem>>, vector<32x32xbf16>
    %cst_60 = arith.constant dense<0.000000e+00> : vector<48x32xf32>
    %174 = tpu.matmul %172, %173, %cst_60 {dimension_numbers = #tpu.dot_dimension_numbers<[1], [0], [0], [1], [0, 0, 1, 1], [], []>} : vector<48x32xbf16>, vector<32x32xbf16>, vector<48x32xf32> -> vector<48x32xf32>
    %c9 = arith.constant 9 : index
    %c0_61 = arith.constant 0 : index
    %175 = vector.load %arg2[%c9, %c0_61] : memref<96x128xf32, #tpu.memory_space<vmem>>, vector<1x32xf32>
    %176 = vector.broadcast %175 : vector<1x32xf32> to vector<48x32xf32>
    %177 = arith.addf %174, %176 : vector<48x32xf32>
    %178 = arith.addf %177, %119 : vector<48x32xf32>
    %c10 = arith.constant 10 : index
    %c0_62 = arith.constant 0 : index
    %179 = vector.load %arg2[%c10, %c0_62] : memref<96x128xf32, #tpu.memory_space<vmem>>, vector<1x32xf32>
    %c11 = arith.constant 11 : index
    %c0_63 = arith.constant 0 : index
    %180 = vector.load %arg2[%c11, %c0_63] : memref<96x128xf32, #tpu.memory_space<vmem>>, vector<1x32xf32>
    %cst_64 = arith.constant dense<0.000000e+00> : vector<48xf32>
    %181 = vector.multi_reduction <add>, %178, %cst_64 [1] : vector<48x32xf32> to vector<48xf32>
    %182 = vector.shape_cast %181 : vector<48xf32> to vector<48x1xf32>
    %cst_65 = arith.constant 3.200000e+01 : f32
    %183 = vector.broadcast %cst_65 : f32 to vector<48x1xf32>
    %184 = arith.divf %182, %183 : vector<48x1xf32>
    %185 = vector.broadcast %184 : vector<48x1xf32> to vector<48x32xf32>
    %186 = arith.subf %178, %185 : vector<48x32xf32>
    %187 = arith.mulf %186, %186 : vector<48x32xf32>
    %cst_66 = arith.constant dense<0.000000e+00> : vector<48xf32>
    %188 = vector.multi_reduction <add>, %187, %cst_66 [1] : vector<48x32xf32> to vector<48xf32>
    %189 = vector.shape_cast %188 : vector<48xf32> to vector<48x1xf32>
    %cst_67 = arith.constant 3.200000e+01 : f32
    %190 = vector.broadcast %cst_67 : f32 to vector<48x1xf32>
    %191 = arith.divf %189, %190 : vector<48x1xf32>
    %192 = vector.broadcast %184 : vector<48x1xf32> to vector<48x32xf32>
    %193 = arith.subf %178, %192 : vector<48x32xf32>
    %cst_68 = arith.constant 9.99999996E-13 : f32
    %194 = vector.broadcast %cst_68 : f32 to vector<48x1xf32>
    %195 = arith.addf %191, %194 : vector<48x1xf32>
    %196 = math.rsqrt %195 : vector<48x1xf32>
    %197 = vector.broadcast %196 : vector<48x1xf32> to vector<48x32xf32>
    %198 = arith.mulf %193, %197 : vector<48x32xf32>
    %199 = vector.broadcast %179 : vector<1x32xf32> to vector<48x32xf32>
    %200 = arith.mulf %198, %199 : vector<48x32xf32>
    %201 = vector.broadcast %180 : vector<1x32xf32> to vector<48x32xf32>
    %202 = arith.addf %200, %201 : vector<48x32xf32>
    %203 = arith.truncf %202 : vector<48x32xf32> to vector<48x32xbf16>
    %c1728 = arith.constant 1728 : index
    %c0_69 = arith.constant 0 : index
    %204 = vector.load %arg1[%c1728, %c0_69] : memref<2016x128xbf16, #tpu.memory_space<vmem>>, vector<32x128xbf16>
    %cst_70 = arith.constant dense<0.000000e+00> : vector<48x128xf32>
    %205 = tpu.matmul %203, %204, %cst_70 {dimension_numbers = #tpu.dot_dimension_numbers<[1], [0], [0], [1], [0, 0, 1, 1], [], []>} : vector<48x32xbf16>, vector<32x128xbf16>, vector<48x128xf32> -> vector<48x128xf32>
    %c12 = arith.constant 12 : index
    %c0_71 = arith.constant 0 : index
    %206 = vector.load %arg2[%c12, %c0_71] : memref<96x128xf32, #tpu.memory_space<vmem>>, vector<1x128xf32>
    %207 = vector.broadcast %206 : vector<1x128xf32> to vector<48x128xf32>
    %208 = arith.addf %205, %207 : vector<48x128xf32>
    %209 = arith.mulf %208, %208 : vector<48x128xf32>
    %210 = arith.mulf %208, %209 : vector<48x128xf32>
    %cst_72 = arith.constant 4.471500e-02 : f32
    %211 = vector.broadcast %cst_72 : f32 to vector<48x128xf32>
    %212 = arith.mulf %211, %210 : vector<48x128xf32>
    %213 = arith.addf %208, %212 : vector<48x128xf32>
    %cst_73 = arith.constant 0.797884583 : f32
    %214 = vector.broadcast %cst_73 : f32 to vector<48x128xf32>
    %215 = arith.mulf %214, %213 : vector<48x128xf32>
    %216 = math.tanh %215 : vector<48x128xf32>
    %cst_74 = arith.constant 1.000000e+00 : f32
    %217 = vector.broadcast %cst_74 : f32 to vector<48x128xf32>
    %218 = arith.addf %217, %216 : vector<48x128xf32>
    %cst_75 = arith.constant 5.000000e-01 : f32
    %219 = vector.broadcast %cst_75 : f32 to vector<48x128xf32>
    %220 = arith.mulf %219, %218 : vector<48x128xf32>
    %221 = arith.mulf %208, %220 : vector<48x128xf32>
    %222 = arith.truncf %221 : vector<48x128xf32> to vector<48x128xbf16>
    %c1760 = arith.constant 1760 : index
    %c0_76 = arith.constant 0 : index
    %223 = vector.load %arg1[%c1760, %c0_76] : memref<2016x128xbf16, #tpu.memory_space<vmem>>, vector<128x32xbf16>
    %cst_77 = arith.constant dense<0.000000e+00> : vector<48x32xf32>
    %224 = tpu.matmul %222, %223, %cst_77 {dimension_numbers = #tpu.dot_dimension_numbers<[1], [0], [0], [1], [0, 0, 1, 1], [], []>} : vector<48x128xbf16>, vector<128x32xbf16>, vector<48x32xf32> -> vector<48x32xf32>
    %c13 = arith.constant 13 : index
    %c0_78 = arith.constant 0 : index
    %225 = vector.load %arg2[%c13, %c0_78] : memref<96x128xf32, #tpu.memory_space<vmem>>, vector<1x32xf32>
    %226 = vector.broadcast %225 : vector<1x32xf32> to vector<48x32xf32>
    %227 = arith.addf %224, %226 : vector<48x32xf32>
    %228 = arith.addf %227, %202 : vector<48x32xf32>
    %c14 = arith.constant 14 : index
    %c0_79 = arith.constant 0 : index
    %229 = vector.load %arg2[%c14, %c0_79] : memref<96x128xf32, #tpu.memory_space<vmem>>, vector<1x32xf32>
    %c15 = arith.constant 15 : index
    %c0_80 = arith.constant 0 : index
    %230 = vector.load %arg2[%c15, %c0_80] : memref<96x128xf32, #tpu.memory_space<vmem>>, vector<1x32xf32>
    %cst_81 = arith.constant dense<0.000000e+00> : vector<48xf32>
    %231 = vector.multi_reduction <add>, %228, %cst_81 [1] : vector<48x32xf32> to vector<48xf32>
    %232 = vector.shape_cast %231 : vector<48xf32> to vector<48x1xf32>
    %cst_82 = arith.constant 3.200000e+01 : f32
    %233 = vector.broadcast %cst_82 : f32 to vector<48x1xf32>
    %234 = arith.divf %232, %233 : vector<48x1xf32>
    %235 = vector.broadcast %234 : vector<48x1xf32> to vector<48x32xf32>
    %236 = arith.subf %228, %235 : vector<48x32xf32>
    %237 = arith.mulf %236, %236 : vector<48x32xf32>
    %cst_83 = arith.constant dense<0.000000e+00> : vector<48xf32>
    %238 = vector.multi_reduction <add>, %237, %cst_83 [1] : vector<48x32xf32> to vector<48xf32>
    %239 = vector.shape_cast %238 : vector<48xf32> to vector<48x1xf32>
    %cst_84 = arith.constant 3.200000e+01 : f32
    %240 = vector.broadcast %cst_84 : f32 to vector<48x1xf32>
    %241 = arith.divf %239, %240 : vector<48x1xf32>
    %242 = vector.broadcast %234 : vector<48x1xf32> to vector<48x32xf32>
    %243 = arith.subf %228, %242 : vector<48x32xf32>
    %cst_85 = arith.constant 9.99999996E-13 : f32
    %244 = vector.broadcast %cst_85 : f32 to vector<48x1xf32>
    %245 = arith.addf %241, %244 : vector<48x1xf32>
    %246 = math.rsqrt %245 : vector<48x1xf32>
    %247 = vector.broadcast %246 : vector<48x1xf32> to vector<48x32xf32>
    %248 = arith.mulf %243, %247 : vector<48x32xf32>
    %249 = vector.broadcast %229 : vector<1x32xf32> to vector<48x32xf32>
    %250 = arith.mulf %248, %249 : vector<48x32xf32>
    %251 = vector.broadcast %230 : vector<1x32xf32> to vector<48x32xf32>
    %252 = arith.addf %250, %251 : vector<48x32xf32>
    %253 = vector.extract_strided_slice %252 {offsets = [0, 0], sizes = [8, 32], strides = [1, 1]} : vector<48x32xf32> to vector<8x32xf32>
    %254 = vector.extract_strided_slice %252 {offsets = [24, 0], sizes = [8, 32], strides = [1, 1]} : vector<48x32xf32> to vector<8x32xf32>
    %255 = tpu.concatenate %253, %254 in 0 : vector<8x32xf32>, vector<8x32xf32> -> vector<16x32xf32>
    %256 = arith.truncf %255 : vector<16x32xf32> to vector<16x32xbf16>
    %c1888 = arith.constant 1888 : index
    %c0_86 = arith.constant 0 : index
    %257 = vector.load %arg1[%c1888, %c0_86] : memref<2016x128xbf16, #tpu.memory_space<vmem>>, vector<32x128xbf16>
    %cst_87 = arith.constant dense<0.000000e+00> : vector<16x128xf32>
    %258 = tpu.matmul %256, %257, %cst_87 {dimension_numbers = #tpu.dot_dimension_numbers<[1], [0], [0], [1], [0, 0, 1, 1], [], []>} : vector<16x32xbf16>, vector<32x128xbf16>, vector<16x128xf32> -> vector<16x128xf32>
    %c16_88 = arith.constant 16 : index
    %c0_89 = arith.constant 0 : index
    %259 = vector.load %arg2[%c16_88, %c0_89] : memref<96x128xf32, #tpu.memory_space<vmem>>, vector<1x128xf32>
    %260 = vector.broadcast %259 : vector<1x128xf32> to vector<16x128xf32>
    %261 = arith.addf %258, %260 : vector<16x128xf32>
    %c0_90 = arith.constant 0 : index
    %c0_91 = arith.constant 0 : index
    %262 = vector.load %arg4[%c0_90, %c0_91] : memref<24x128xf32, #tpu.memory_space<vmem>>, vector<16x128xf32>
    tpu.vector_store %arg4[%c0_90, %c0_91], %261 {strides = array<i32>} : memref<24x128xf32, #tpu.memory_space<vmem>>, vector<16x128xf32>,
    %c16_92 = arith.constant 16 : index
    %c0_93 = arith.constant 0 : index
    %263 = vector.load %arg4[%c16_92, %c0_93] : memref<24x128xf32, #tpu.memory_space<vmem>>, vector<2x128xf32>
    tpu.vector_store %arg4[%c16_92, %c0_93], %60 {strides = array<i32>} : memref<24x128xf32, #tpu.memory_space<vmem>>, vector<2x128xf32>,
    %cst_94 = arith.constant 0.000000e+00 : f32
    %264 = vector.broadcast %cst_94 : f32 to vector<1x128xf32>
    %265 = vector.broadcast %87 : f32 to vector<1x128xf32>
    %266 = arith.addf %264, %265 : vector<1x128xf32>
    %c18_95 = arith.constant 18 : index
    %c0_96 = arith.constant 0 : index
    %267 = vector.load %arg4[%c18_95, %c0_96] : memref<24x128xf32, #tpu.memory_space<vmem>>, vector<1x128xf32>
    tpu.vector_store %arg4[%c18_95, %c0_96], %266 {strides = array<i32>} : memref<24x128xf32, #tpu.memory_space<vmem>>, vector<1x128xf32>,
    %cst_97 = arith.constant 0.000000e+00 : f32
    %268 = vector.broadcast %cst_97 : f32 to vector<5x128xf32>
    %c19 = arith.constant 19 : index
    %c0_98 = arith.constant 0 : index
    %269 = vector.load %arg4[%c19, %c0_98] : memref<24x128xf32, #tpu.memory_space<vmem>>, vector<5x128xf32>
    tpu.vector_store %arg4[%c19, %c0_98], %268 {strides = array<i32>} : memref<24x128xf32, #tpu.memory_space<vmem>>, vector<5x128xf32>,
    return
  }
}

</mosaic_0001>

<bundles_post_ra>
// kernel: multitask_forward.1
= control target key start
LH: loop header
LB: loop body
LE: loop exit
PB: predicated region body
PF: predicated region fallthrough
CT: control target
= control target key end

     0   :  { %vm1162_vm0 = vcmask 523264   ;;  %vm1329_vm2 = vcmask 261120   ;;  %s4581_s1 = inlined_call_operand.vmem [shape: bf16[2016,128], index: 1, kind: input, shape index: {}]   ;;  %s4582_s0 = inlined_call_operand.vmem [shape: bf16[32,1536], index: 0, kind: input, shape index: {}]   ;;  %s4583_s2 = inlined_call_operand.vmem [shape: f32[96,128], index: 2, kind: input, shape index: {}]   ;;  %s4584_s3 = inlined_call_operand.vmem [shape: f32[64,128], index: 3, kind: input, shape index: {}]   ;;  %s4585_s4 = inlined_call_operand.vmem [shape: f32[24,128], index: 4, kind: output, shape index: {}]  }
   0x1   :  { %v3350_v0 = vld [vmem:[%s4581_s1 + $0x38] sm:$0xff]  ;;  %v3349_v4 = vld [vmem:[%s4581_s1 + $0x30] sm:$0xff]  ;;  %v3348_v8 = vld [vmem:[%s4581_s1 + $0x28] sm:$0xff] }
   0x2   :  { %v3358_v1 = vld [vmem:[%s4581_s1 + $0x78] sm:$0xff]  ;;  %932 = vmatpush.bf16.msra.mxu0 %v3350_v0  ;;  %v3357_v5 = vld [vmem:[%s4581_s1 + $0x70] sm:$0xff]  ;;  %v3356_v9 = vld [vmem:[%s4581_s1 + $0x68] sm:$0xff] }
   0x3   :  { %v3366_v2 = vld [vmem:[%s4581_s1 + $0xb8] sm:$0xff]  ;;  %951 = vmatpush.bf16.msra.mxu1 %v3358_v1  ;;  %v3365_v6 = vld [vmem:[%s4581_s1 + $0xb0] sm:$0xff]  ;;  %v3364_v10 = vld [vmem:[%s4581_s1 + $0xa8] sm:$0xff] }
   0x4   :  { %v3374_v3 = vld [vmem:[%s4581_s1 + $0xf8] sm:$0xff]  ;;  %970 = vmatpush.bf16.msra.mxu2 %v3366_v2  ;;  %v3373_v7 = vld [vmem:[%s4581_s1 + $0xf0] sm:$0xff]  ;;  %v3372_v11 = vld [vmem:[%s4581_s1 + $0xe8] sm:$0xff] }
   0x5   :  { %989 = vmatpush.bf16.msra.mxu3 %v3374_v3  ;;  %v3347_v12 = vld [vmem:[%s4581_s1 + $0x20] sm:$0xff]  ;;  %v3346_v16 = vld [vmem:[%s4581_s1 + $0x18] sm:$0xff]  ;;  %v3345_v20 = vld [vmem:[%s4581_s1 + $0x10] sm:$0xff] }
   0x6   :  { %933 = vmatpush.bf16.msra.mxu0 %v3349_v4  ;;  %v3355_v13 = vld [vmem:[%s4581_s1 + $0x60] sm:$0xff]  ;;  %v3354_v17 = vld [vmem:[%s4581_s1 + $0x58] sm:$0xff]  ;;  %v3353_v21 = vld [vmem:[%s4581_s1 + $0x50] sm:$0xff] }
   0x7   :  { %952 = vmatpush.bf16.msra.mxu1 %v3357_v5  ;;  %v3363_v14 = vld [vmem:[%s4581_s1 + $0xa0] sm:$0xff]  ;;  %v3362_v18 = vld [vmem:[%s4581_s1 + $0x98] sm:$0xff]  ;;  %v3361_v22 = vld [vmem:[%s4581_s1 + $0x90] sm:$0xff] }
   0x8   :  { %971 = vmatpush.bf16.msra.mxu2 %v3365_v6  ;;  %v3371_v15 = vld [vmem:[%s4581_s1 + $0xe0] sm:$0xff]  ;;  %v3370_v19 = vld [vmem:[%s4581_s1 + $0xd8] sm:$0xff]  ;;  %v3369_v23 = vld [vmem:[%s4581_s1 + $0xd0] sm:$0xff] }
   0x9   :  { %990 = vmatpush.bf16.msra.mxu3 %v3373_v7  ;;  %v3344_v24 = vld [vmem:[%s4581_s1 + $0x8] sm:$0xff]  ;;  %v3343_v28 = vld [vmem:[%s4581_s1] sm:$0xff]  ;;  %v3325_v31 = vld [vmem:[%s4582_s0 + $0x2c] sm:$0xf0] }
   0xa   :  { %934 = vmatpush.bf16.msra.mxu0 %v3348_v8  ;;  %v3352_v25 = vld [vmem:[%s4581_s1 + $0x48] sm:$0xff]  ;;  %v3351_v29 = vld [vmem:[%s4581_s1 + $0x40] sm:$0xff]  ;;  %v2689_v33 = vld [vmem:[%s4582_s0 + $0x30] sm:$0xf0] }
   0xb   :  { %953 = vmatpush.bf16.msra.mxu1 %v3356_v9  ;;  %v3360_v26 = vld [vmem:[%s4581_s1 + $0x88] sm:$0xff]  ;;  %v2687_v30 = vld [vmem:[%s4582_s0] sm:$0xf]  ;;  %v3319_v32 = vld [vmem:[%s4582_s0 + $0x4] sm:$0xf] }
   0xc   :  { %972 = vmatpush.bf16.msra.mxu2 %v3364_v10  ;;  %v3368_v27 = vld [vmem:[%s4581_s1 + $0xc8] sm:$0xff]  ;;  %v3359_v34 = vld [vmem:[%s4581_s1 + $0x80] sm:$0xff]  ;;  %v3326_v37 = vld [vmem:[%s4582_s0 + $0x34] sm:$0xf0]  ;;  %v2688_v42 = vor.u32 %v3325_v31, %v2687_v30  ;;  %v2692_v43 = vor.u32 %v3319_v32, %v2689_v33 }
   0xd   :  { %991 = vmatpush.bf16.msra.mxu3 %v3372_v11  ;;  %v3367_v35 = vld [vmem:[%s4581_s1 + $0xc0] sm:$0xff]  ;;  %v2695_v36 = vld [vmem:[%s4582_s0 + $0x8] sm:$0xf]  ;;  %v3320_v38 = vld [vmem:[%s4582_s0 + $0xc] sm:$0xf] }
   0xe   :  { %935 = vmatpush.bf16.msra.mxu0 %v3347_v12  ;;  %v2697_v39 = vld [vmem:[%s4582_s0 + $0x38] sm:$0xf0]  ;;  %v2696_v44 = vor.u32 %v3326_v37, %v2695_v36  ;;  %v3381_v48 = vld [vmem:[%s4581_s1 + $0x130] sm:$0xff]  ;;  %v3380_v52 = vld [vmem:[%s4581_s1 + $0x128] sm:$0xff] }
   0xf   :  { %954 = vmatpush.bf16.msra.mxu1 %v3355_v13  ;;  %v3382_v40 = vld [vmem:[%s4581_s1 + $0x138] sm:$0xff]  ;;  %v2700_v45 = vor.u32 %v3320_v38, %v2697_v39  ;;  %v3389_v49 = vld [vmem:[%s4581_s1 + $0x170] sm:$0xff]  ;;  %v3388_v53 = vld [vmem:[%s4581_s1 + $0x168] sm:$0xff] }
  0x10   :  { %973 = vmatpush.bf16.msra.mxu2 %v3363_v14  ;;  %v3390_v41 = vld [vmem:[%s4581_s1 + $0x178] sm:$0xff]  ;;  %v3397_v50 = vld [vmem:[%s4581_s1 + $0x1b0] sm:$0xff]  ;;  %v3396_v54 = vld [vmem:[%s4581_s1 + $0x1a8] sm:$0xff] }
  0x11   :  { %992 = vmatpush.bf16.msra.mxu3 %v3371_v15  ;;  %v3398_v46 = vld [vmem:[%s4581_s1 + $0x1b8] sm:$0xff]  ;;  %v3405_v51 = vld [vmem:[%s4581_s1 + $0x1f0] sm:$0xff]  ;;  %v3404_v55 = vld [vmem:[%s4581_s1 + $0x1e8] sm:$0xff] }
  0x12   :  { %936 = vmatpush.bf16.msra.mxu0 %v3346_v16  ;;  %v3406_v47 = vld [vmem:[%s4581_s1 + $0x1f8] sm:$0xff]  ;;  %v3379_v56 = vld [vmem:[%s4581_s1 + $0x120] sm:$0xff]  ;;  %v3337_v61 = vld [vmem:[%s4582_s0 + $0x8c] sm:$0xf0] }
  0x13   :  { %955 = vmatpush.bf16.msra.mxu1 %v3354_v17  ;;  %v3387_v57 = vld [vmem:[%s4581_s1 + $0x160] sm:$0xff]  ;;  %v2737_v63 = vld [vmem:[%s4582_s0 + $0x90] sm:$0xf0]  ;;  %v2743_v0 = vld [vmem:[%s4582_s0 + $0x68] sm:$0xf] }
  0x14   :  { %974 = vmatpush.bf16.msra.mxu2 %v3362_v18  ;;  %v3395_v58 = vld [vmem:[%s4581_s1 + $0x1a0] sm:$0xff]  ;;  %v3338_v1 = vld [vmem:[%s4582_s0 + $0x94] sm:$0xf0]  ;;  %v3332_v2 = vld [vmem:[%s4582_s0 + $0x6c] sm:$0xf] }
  0x15   :  { %993 = vmatpush.bf16.msra.mxu3 %v3370_v19  ;;  %v3403_v59 = vld [vmem:[%s4581_s1 + $0x1e0] sm:$0xff]  ;;  %v2745_v3 = vld [vmem:[%s4582_s0 + $0x98] sm:$0xf0]  ;;  %v2744_v8 = vor.u32 %v3338_v1, %v2743_v0  ;;  %v3377_v12 = vld [vmem:[%s4581_s1 + $0x110] sm:$0xff] }
  0x16   :  { %937 = vmatpush.bf16.msra.mxu0 %v3345_v20  ;;  %v2735_v60 = vld [vmem:[%s4582_s0 + $0x60] sm:$0xf]  ;;  %v3331_v62 = vld [vmem:[%s4582_s0 + $0x64] sm:$0xf]  ;;  %v3378_v4 = vld [vmem:[%s4581_s1 + $0x118] sm:$0xff]  ;;  %v2748_v9 = vor.u32 %v3332_v2, %v2745_v3 }
  0x17   :  { %956 = vmatpush.bf16.msra.mxu1 %v3353_v21  ;;  %v3386_v5 = vld [vmem:[%s4581_s1 + $0x158] sm:$0xff]  ;;  %v2736_v6 = vor.u32 %v3337_v61, %v2735_v60  ;;  %v2740_v7 = vor.u32 %v3331_v62, %v2737_v63  ;;  %v3385_v13 = vld [vmem:[%s4581_s1 + $0x150] sm:$0xff]  ;;  %v3376_v16 = vld [vmem:[%s4581_s1 + $0x108] sm:$0xff] }
  0x18   :  { %975 = vmatpush.bf16.msra.mxu2 %v3361_v22  ;;  %v3394_v10 = vld [vmem:[%s4581_s1 + $0x198] sm:$0xff]  ;;  %v3393_v14 = vld [vmem:[%s4581_s1 + $0x190] sm:$0xff]  ;;  %v3384_v17 = vld [vmem:[%s4581_s1 + $0x148] sm:$0xff] }
  0x19   :  { %994 = vmatpush.bf16.msra.mxu3 %v3369_v23  ;;  %v3402_v11 = vld [vmem:[%s4581_s1 + $0x1d8] sm:$0xff]  ;;  %v3401_v15 = vld [vmem:[%s4581_s1 + $0x1d0] sm:$0xff]  ;;  %v3392_v18 = vld [vmem:[%s4581_s1 + $0x188] sm:$0xff] }
  0x1a   :  { %938 = vmatpush.bf16.msra.mxu0 %v3344_v24  ;;  %v3400_v19 = vld [vmem:[%s4581_s1 + $0x1c8] sm:$0xff]  ;;  %v3375_v20 = vld [vmem:[%s4581_s1 + $0x100] sm:$0xff]  ;;  %v2703_v22 = vld [vmem:[%s4582_s0 + $0x10] sm:$0xf] }
  0x1b   :  { %957 = vmatpush.bf16.msra.mxu1 %v3352_v25  ;;  %v3383_v21 = vld [vmem:[%s4581_s1 + $0x140] sm:$0xff]  ;;  %v2711_v30 = vld [vmem:[%s4582_s0 + $0x18] sm:$0xf]  ;;  %v3328_v31 = vld [vmem:[%s4582_s0 + $0x44] sm:$0xf0] }
  0x1c   :  { %976 = vmatpush.bf16.msra.mxu2 %v3360_v26  ;;  %v3391_v23 = vld [vmem:[%s4581_s1 + $0x180] sm:$0xff]  ;;  %v3414_v26 = vld [vmem:[%s4581_s1 + $0x238] sm:$0xff]  ;;  %v2713_v33 = vld [vmem:[%s4582_s0 + $0x48] sm:$0xf0]  ;;  %v2712_v38 = vor.u32 %v3328_v31, %v2711_v30 }
  0x1d   :  { %995 = vmatpush.bf16.msra.mxu3 %v3368_v27  ;;  %v3399_v24 = vld [vmem:[%s4581_s1 + $0x1c0] sm:$0xff]  ;;  %v3422_v27 = vld [vmem:[%s4581_s1 + $0x278] sm:$0xff]  ;;  %v2775_v30 = vld [vmem:[%s4582_s0 + $0x88] sm:$0xf] }
  0x1e   :  { %939 = vmatpush.bf16.msra.mxu0 %v3343_v28  ;;  %v3327_v25 = vld [vmem:[%s4582_s0 + $0x3c] sm:$0xf0]  ;;  %v3321_v28 = vld [vmem:[%s4582_s0 + $0x14] sm:$0xf]  ;;  %v3322_v32 = vld [vmem:[%s4582_s0 + $0x1c] sm:$0xf] }
  0x1f   :  { %958 = vmatpush.bf16.msra.mxu1 %v3351_v29  ;;  %v2705_v29 = vld [vmem:[%s4582_s0 + $0x40] sm:$0xf0]  ;;  %v2704_v36 = vor.u32 %v3327_v25, %v2703_v22  ;;  %v2716_v39 = vor.u32 %v3322_v32, %v2713_v33  ;;  %v3410_v60 = vld [vmem:[%s4581_s1 + $0x218] sm:$0xff]  ;;  %v3324_v22 = vld [vmem:[%s4582_s0 + $0x2c] sm:$0xf] }
  0x20   :  { %977 = vmatpush.bf16.msra.mxu2 %v3359_v34  ;;  %v3430_v34 = vld [vmem:[%s4581_s1 + $0x2b8] sm:$0xff]  ;;  %v2708_v37 = vor.u32 %v3321_v28, %v2705_v29  ;;  %v2767_v28 = vld [vmem:[%s4582_s0 + $0x80] sm:$0xf]  ;;  %v3341_v29 = vld [vmem:[%s4582_s0 + $0xac] sm:$0xf0] }
  0x21   :  { %996 = vmatpush.bf16.msra.mxu3 %v3367_v35  ;;  %940 = vmatmul.bf16.vlgmr.msra.gmra.mxu0 %v2688_v42  ;;  %v3438_v35 = vld [vmem:[%s4581_s1 + $0x2f8] sm:$0xff]  ;;  %v3429_v42 = vld [vmem:[%s4581_s1 + $0x2b0] sm:$0xff]  ;;  %v3335_v31 = vld [vmem:[%s4582_s0 + $0x84] sm:$0xf] }
  0x22   :  { %1008 = vmatpush.bf16.msrb.mxu0 %v3382_v40  ;;  %959 = vmatmul.bf16.vlgmr.msra.gmra.mxu1 %v2692_v43  ;;  %v3413_v40 = vld [vmem:[%s4581_s1 + $0x230] sm:$0xff]  ;;  %v3418_v61 = vld [vmem:[%s4581_s1 + $0x258] sm:$0xff] }
  0x23   :  { %1027 = vmatpush.bf16.msrb.mxu1 %v3390_v41  ;;  %978 = vmatmul.bf16.vlgmr.msra.gmra.mxu2 %v2696_v44  ;;  %v3421_v41 = vld [vmem:[%s4581_s1 + $0x270] sm:$0xff]  ;;  %v3412_v44 = vld [vmem:[%s4581_s1 + $0x228] sm:$0xff]  ;;  %v3426_v62 = vld [vmem:[%s4581_s1 + $0x298] sm:$0xff] }
  0x24   :  { %997 = vmatmul.bf16.vlgmr.msra.gmra.mxu3 %v2700_v45  ;;  %1046 = vmatpush.bf16.msrb.mxu2 %v3398_v46  ;;  %v3437_v43 = vld [vmem:[%s4581_s1 + $0x2f0] sm:$0xff]  ;;  %v3420_v45 = vld [vmem:[%s4581_s1 + $0x268] sm:$0xff]  ;;  %v3434_v63 = vld [vmem:[%s4581_s1 + $0x2d8] sm:$0xff] }
  0x25   :  { %1065 = vmatpush.bf16.msrb.mxu3 %v3406_v47  ;;  %v3428_v46 = vld [vmem:[%s4581_s1 + $0x2a8] sm:$0xff]  ;;  %v2769_v32 = vld [vmem:[%s4582_s0 + $0xb0] sm:$0xf0]  ;;  %v3342_v33 = vld [vmem:[%s4582_s0 + $0xb4] sm:$0xf0] }
  0x26   :  { %1009 = vmatpush.bf16.msrb.mxu0 %v3381_v48  ;;  %v3436_v47 = vld [vmem:[%s4581_s1 + $0x2e8] sm:$0xff]  ;;  %v3411_v48 = vld [vmem:[%s4581_s1 + $0x220] sm:$0xff] }
  0x27   :  { %1028 = vmatpush.bf16.msrb.mxu1 %v3389_v49  ;;  %v3419_v49 = vld [vmem:[%s4581_s1 + $0x260] sm:$0xff] }
  0x28   :  { %1047 = vmatpush.bf16.msrb.mxu2 %v3397_v50  ;;  %v3427_v50 = vld [vmem:[%s4581_s1 + $0x2a0] sm:$0xff] }
  0x29   :  { %1066 = vmatpush.bf16.msrb.mxu3 %v3405_v51  ;;  %v3435_v51 = vld [vmem:[%s4581_s1 + $0x2e0] sm:$0xff] }
  0x2a   :  { %1010 = vmatpush.bf16.msrb.mxu0 %v3380_v52  ;;  %v2751_v52 = vld [vmem:[%s4582_s0 + $0x70] sm:$0xf] }
  0x2b   :  { %1029 = vmatpush.bf16.msrb.mxu1 %v3388_v53  ;;  %v3339_v53 = vld [vmem:[%s4582_s0 + $0x9c] sm:$0xf0] }
  0x2c   :  { %1048 = vmatpush.bf16.msrb.mxu2 %v3396_v54  ;;  %v3333_v54 = vld [vmem:[%s4582_s0 + $0x74] sm:$0xf]  ;;  %v2752_v0 = vor.u32 %v3339_v53, %v2751_v52 }
  0x2d   :  { %1067 = vmatpush.bf16.msrb.mxu3 %v3404_v55  ;;  %v2753_v55 = vld [vmem:[%s4582_s0 + $0xa0] sm:$0xf0] }
  0x2e   :  { %1011 = vmatpush.bf16.msrb.mxu0 %v3379_v56  ;;  %v2759_v56 = vld [vmem:[%s4582_s0 + $0x78] sm:$0xf]  ;;  %v2756_v1 = vor.u32 %v3333_v54, %v2753_v55 }
  0x2f   :  { %1030 = vmatpush.bf16.msrb.mxu1 %v3387_v57  ;;  %v3340_v57 = vld [vmem:[%s4582_s0 + $0xa4] sm:$0xf0] }
  0x30   :  { %1049 = vmatpush.bf16.msrb.mxu2 %v3395_v58  ;;  %v3334_v58 = vld [vmem:[%s4582_s0 + $0x7c] sm:$0xf]  ;;  %v2760_v2 = vor.u32 %v3340_v57, %v2759_v56 }
  0x31   :  { %1068 = vmatpush.bf16.msrb.mxu3 %v3403_v59  ;;  %945 = vmatmul.bf16.gmra.mxu0 %v2736_v6  ;;  %v2761_v59 = vld [vmem:[%s4582_s0 + $0xa8] sm:$0xf0]  ;;  %v3425_v6 = vld [vmem:[%s4581_s1 + $0x290] sm:$0xff] }
  0x32   :  { %1012 = vmatpush.bf16.msrb.mxu0 %v3378_v4  ;;  %964 = vmatmul.bf16.gmra.mxu1 %v2740_v7  ;;  %v2764_v3 = vor.u32 %v3334_v58, %v2761_v59  ;;  %v3409_v4 = vld [vmem:[%s4581_s1 + $0x210] sm:$0xff]  ;;  %v3479_v58 = vld [vmem:[%s4583_s2] ss:$0 sm:$0xff] }
  0x33   :  { %1031 = vmatpush.bf16.msrb.mxu1 %v3386_v5  ;;  %983 = vmatmul.bf16.gmra.mxu2 %v2744_v8  ;;  %v3417_v5 = vld [vmem:[%s4581_s1 + $0x250] sm:$0xff]  ;;  %v3408_v8 = vld [vmem:[%s4581_s1 + $0x208] sm:$0xff] }
  0x34   :  { %1002 = vmatmul.bf16.gmra.mxu3 %v2748_v9  ;;  %1050 = vmatpush.bf16.msrb.mxu2 %v3394_v10  ;;  %v3433_v7 = vld [vmem:[%s4581_s1 + $0x2d0] sm:$0xff]  ;;  %v3416_v9 = vld [vmem:[%s4581_s1 + $0x248] sm:$0xff] }
  0x35   :  { %1069 = vmatpush.bf16.msrb.mxu3 %v3402_v11  ;;  %v3424_v10 = vld [vmem:[%s4581_s1 + $0x288] sm:$0xff] }
  0x36   :  { %1013 = vmatpush.bf16.msrb.mxu0 %v3377_v12  ;;  %v3432_v11 = vld [vmem:[%s4581_s1 + $0x2c8] sm:$0xff]  ;;  %v3407_v12 = vld [vmem:[%s4581_s1 + $0x200] sm:$0xff] }
  0x37   :  { %1032 = vmatpush.bf16.msrb.mxu1 %v3385_v13  ;;  %v3415_v13 = vld [vmem:[%s4581_s1 + $0x240] sm:$0xff] }
  0x38   :  { %1051 = vmatpush.bf16.msrb.mxu2 %v3393_v14  ;;  %v3423_v14 = vld [vmem:[%s4581_s1 + $0x280] sm:$0xff] }
  0x39   :  { %1070 = vmatpush.bf16.msrb.mxu3 %v3401_v15  ;;  %v3431_v15 = vld [vmem:[%s4581_s1 + $0x2c0] sm:$0xff] }
  0x3a   :  { %1014 = vmatpush.bf16.msrb.mxu0 %v3376_v16  ;;  %v2719_v16 = vld [vmem:[%s4582_s0 + $0x20] sm:$0xf] }
  0x3b   :  { %1033 = vmatpush.bf16.msrb.mxu1 %v3384_v17  ;;  %v3329_v17 = vld [vmem:[%s4582_s0 + $0x4c] sm:$0xf0] }
  0x3c   :  { %1052 = vmatpush.bf16.msrb.mxu2 %v3392_v18  ;;  %v3323_v18 = vld [vmem:[%s4582_s0 + $0x24] sm:$0xf] }
  0x3d   :  { %1071 = vmatpush.bf16.msrb.mxu3 %v3400_v19  ;;  %v2721_v19 = vld [vmem:[%s4582_s0 + $0x50] sm:$0xf0] }
  0x3e   :  { %1015 = vmatpush.bf16.msrb.mxu0 %v3375_v20  ;;  %v2727_v20 = vld [vmem:[%s4582_s0 + $0x28] sm:$0xf]  ;;  %v2724_v25 = vor.u32 %v3323_v18, %v2721_v19 }
  0x3f   :  { %1034 = vmatpush.bf16.msrb.mxu1 %v3383_v21  ;;  %v3330_v21 = vld [vmem:[%s4582_s0 + $0x54] sm:$0xf0] }
  0x40   :  { %1053 = vmatpush.bf16.msrb.mxu2 %v3391_v23  ;;  %v2729_v23 = vld [vmem:[%s4582_s0 + $0x58] sm:$0xf0] }
  0x41   :  { %1072 = vmatpush.bf16.msrb.mxu3 %v3399_v24  ;;  %1016 = vmatmul.bf16.vlgmr.msrb.gmra.mxu0 %v2704_v36  ;;  %v2720_v24 = vor.u32 %v3329_v17, %v2719_v16  ;;  %v2768_v36 = vor.u32 %v3341_v29, %v2767_v28 }
  0x42   :  { %1084 = vmatpush.bf16.msra.mxu0 %v3414_v26  ;;  %1035 = vmatmul.bf16.vlgmr.msrb.gmra.mxu1 %v2708_v37  ;;  %v2728_v26 = vor.u32 %v3330_v21, %v2727_v20  ;;  %v2772_v37 = vor.u32 %v3335_v31, %v2769_v32 }
  0x43   :  { %1103 = vmatpush.bf16.msra.mxu1 %v3422_v27  ;;  %1054 = vmatmul.bf16.vlgmr.msrb.gmra.mxu2 %v2712_v38  ;;  %v2732_v27 = vor.u32 %v3324_v22, %v2729_v23  ;;  %v2776_v38 = vor.u32 %v3342_v33, %v2775_v30 }
  0x44   :  { %1122 = vmatpush.bf16.msra.mxu2 %v3430_v34  ;;  %1073 = vmatmul.bf16.vlgmr.msrb.gmra.mxu3 %v2716_v39  ;;  %v3336_v34 = vld [vmem:[%s4582_s0 + $0x8c] sm:$0xf] }
  0x45   :  { %1141 = vmatpush.bf16.msra.mxu3 %v3438_v35  ;;  %v2777_v35 = vld [vmem:[%s4582_s0 + $0xb8] sm:$0xf0] }
  0x46   :  { %1085 = vmatpush.bf16.msra.mxu0 %v3413_v40  ;;  %v2780_v39 = vor.u32 %v3336_v34, %v2777_v35 }
  0x47   :  { %1104 = vmatpush.bf16.msra.mxu1 %v3421_v41 }
  0x48   :  { %1123 = vmatpush.bf16.msra.mxu2 %v3429_v42 }
  0x49   :  { %1142 = vmatpush.bf16.msra.mxu3 %v3437_v43 }
  0x4a   :  { %1086 = vmatpush.bf16.msra.mxu0 %v3412_v44 }
  0x4b   :  { %1105 = vmatpush.bf16.msra.mxu1 %v3420_v45 }
  0x4c   :  { %1124 = vmatpush.bf16.msra.mxu2 %v3428_v46 }
  0x4d   :  { %1143 = vmatpush.bf16.msra.mxu3 %v3436_v47 }
  0x4e   :  { %1087 = vmatpush.bf16.msra.mxu0 %v3411_v48 }
  0x4f   :  { %1106 = vmatpush.bf16.msra.mxu1 %v3419_v49 }
  0x50   :  { %1125 = vmatpush.bf16.msra.mxu2 %v3427_v50 }
  0x51   :  { %1144 = vmatpush.bf16.msra.mxu3 %v3435_v51  ;;  %1021 = vmatmul.bf16.gmra.mxu0 %v2752_v0 }
  0x52   :  { %1088 = vmatpush.bf16.msra.mxu0 %v3410_v60  ;;  %1040 = vmatmul.bf16.gmra.mxu1 %v2756_v1 }
  0x53   :  { %1107 = vmatpush.bf16.msra.mxu1 %v3418_v61  ;;  %1059 = vmatmul.bf16.gmra.mxu2 %v2760_v2 }
  0x54   :  { %1126 = vmatpush.bf16.msra.mxu2 %v3426_v62  ;;  %1078 = vmatmul.bf16.gmra.mxu3 %v2764_v3 }
  0x55   :  { %1145 = vmatpush.bf16.msra.mxu3 %v3434_v63 }
  0x56   :  { %1089 = vmatpush.bf16.msra.mxu0 %v3409_v4 }
  0x57   :  { %1108 = vmatpush.bf16.msra.mxu1 %v3417_v5 }
  0x58   :  { %1127 = vmatpush.bf16.msra.mxu2 %v3425_v6 }
  0x59   :  { %1146 = vmatpush.bf16.msra.mxu3 %v3433_v7 }
  0x5a   :  { %1090 = vmatpush.bf16.msra.mxu0 %v3408_v8 }
  0x5b   :  { %1109 = vmatpush.bf16.msra.mxu1 %v3416_v9 }
  0x5c   :  { %1128 = vmatpush.bf16.msra.mxu2 %v3424_v10 }
  0x5d   :  { %1147 = vmatpush.bf16.msra.mxu3 %v3432_v11 }
  0x5e   :  { %1091 = vmatpush.bf16.msra.mxu0 %v3407_v12 }
  0x5f   :  { %1110 = vmatpush.bf16.msra.mxu1 %v3415_v13 }
  0x60   :  { %1129 = vmatpush.bf16.msra.mxu2 %v3423_v14 }
  0x61   :  { %1148 = vmatpush.bf16.msra.mxu3 %v3431_v15  ;;  %1092 = vmatmul.bf16.vlgmr.msra.gmra.mxu0 %v2720_v24 }
  0x62   :  { %1111 = vmatmul.bf16.vlgmr.msra.gmra.mxu1 %v2724_v25 }
  0x63   :  { %1130 = vmatmul.bf16.vlgmr.msra.gmra.mxu2 %v2728_v26 }
  0x64   :  { %1149 = vmatmul.bf16.vlgmr.msra.gmra.mxu3 %v2732_v27 }
  0x71   :  { %1097 = vmatmul.bf16.gmra.mxu0 %v2768_v36 }
  0x72   :  { %1116 = vmatmul.bf16.gmra.mxu1 %v2772_v37 }
  0x73   :  { %1135 = vmatmul.bf16.gmra.mxu2 %v2776_v38 }
  0x74   :  { %1154 = vmatmul.bf16.gmra.mxu3 %v2780_v39 }
  0x9e   :  { %v941_v40 = vpop.f32.mrf.mxu0 }
  0x9f   :  { %v960_v41 = vpop.f32.mrf.mxu1  ;;  %v942_v61 = vadd.f32 %v3479_v58, %v941_v40 }
  0xa1   :  { %v961_v0 = vadd.f32 %v960_v41, %v942_v61 }
  0xa6   :  { %v979_v42 = vpop.f32.mrf.mxu2  ;;  %v943_v44 = vpop.f32.mrf.mxu0 }
  0xa7   :  { %v998_v43 = vpop.f32.mrf.mxu3  ;;  %v962_v45 = vpop.f32.mrf.mxu1  ;;  %v980_v3 = vadd.f32 %v979_v42, %v961_v0  ;;  %v944_v6 = vadd.f32 %v3479_v58, %v943_v44 }
  0xa9   :  { %v999_v7 = vadd.f32 %v998_v43, %v980_v3  ;;  %v963_v8 = vadd.f32 %v962_v45, %v944_v6 }
  0xae   :  { %v981_v46 = vpop.f32.mrf.mxu2  ;;  %v946_v48 = vpop.f32.mrf.mxu0 }
  0xaf   :  { %v1000_v47 = vpop.f32.mrf.mxu3  ;;  %v965_v49 = vpop.f32.mrf.mxu1  ;;  %v982_v12 = vadd.f32 %v981_v46, %v963_v8  ;;  %v947_v13 = vadd.f32 %v3479_v58, %v946_v48 }
  0xb1   :  { %v1001_v17 = vadd.f32 %v1000_v47, %v982_v12  ;;  %v966_v18 = vadd.f32 %v965_v49, %v947_v13  ;;  %v3584_v13 = vmov 64.0  }
  0xb2   :  { %3498 = vrcp.f32 %v3584_v13 }
  0xb6   :  { %v984_v50 = vpop.f32.mrf.mxu2  ;;  %v948_v52 = vpop.f32.mrf.mxu0 }
  0xb7   :  { %v1003_v51 = vpop.f32.mrf.mxu3  ;;  %v967_v53 = vpop.f32.mrf.mxu1  ;;  %v985_v23 = vadd.f32 %v984_v50, %v966_v18  ;;  %v949_v27 = vadd.f32 %v3479_v58, %v948_v52 }
  0xb9   :  { %v1004_v30 = vadd.f32 %v1003_v51, %v985_v23  ;;  %v968_v32 = vadd.f32 %v967_v53, %v949_v27 }
  0xbe   :  { %v986_v54 = vpop.f32.mrf.mxu2  ;;  %v1017_v56 = vpop.f32.mrf.mxu0 }
  0xbf   :  { %v1005_v55 = vpop.f32.mrf.mxu3  ;;  %v1036_v57 = vpop.f32.mrf.mxu1  ;;  %v1018_v9 = vadd.f32 %v1017_v56, %v999_v7  ;;  %v987_v37 = vadd.f32 %v986_v54, %v968_v32 }
  0xc1   :  { %v1037_v16 = vadd.f32 %v1036_v57, %v1018_v9  ;;  %v1006_v45 = vadd.f32 %v1005_v55, %v987_v37 }
  0xc6   :  { %v1055_v59 = vpop.f32.mrf.mxu2  ;;  %v1019_v62 = vpop.f32.mrf.mxu0 }
  0xc7   :  { %v1074_v60 = vpop.f32.mrf.mxu3  ;;  %v1038_v63 = vpop.f32.mrf.mxu1  ;;  %v1056_v19 = vadd.f32 %v1055_v59, %v1037_v16  ;;  %v1020_v20 = vadd.f32 %v1019_v62, %v1001_v17 }
  0xc9   :  { %v1075_v24 = vadd.f32 %v1074_v60, %v1056_v19  ;;  %v1039_v28 = vadd.f32 %v1038_v63, %v1020_v20 }
  0xce   :  { %v1057_v1 = vpop.f32.mrf.mxu2  ;;  %v1022_v4 = vpop.f32.mrf.mxu0 }
  0xcf   :  { %v1076_v2 = vpop.f32.mrf.mxu3  ;;  %v1041_v5 = vpop.f32.mrf.mxu1  ;;  %v1058_v31 = vadd.f32 %v1057_v1, %v1039_v28  ;;  %v1023_v33 = vadd.f32 %v1022_v4, %v1004_v30 }
  0xd1   :  { %v1077_v38 = vadd.f32 %v1076_v2, %v1058_v31  ;;  %v1042_v42 = vadd.f32 %v1041_v5, %v1023_v33 }
  0xd6   :  { %v1060_v10 = vpop.f32.mrf.mxu2  ;;  %v1024_v14 = vpop.f32.mrf.mxu0 }
  0xd7   :  { %v1079_v11 = vpop.f32.mrf.mxu3  ;;  %v1043_v15 = vpop.f32.mrf.mxu1  ;;  %v1061_v46 = vadd.f32 %v1060_v10, %v1042_v42  ;;  %v1025_v48 = vadd.f32 %v1024_v14, %v1006_v45  ;;  %v1561_v42 = vld [vmem:[%s4583_s2 + $0x18] sm:$0xff] }
  0xd8   :  { %v3499_v14 = vpop.eup %3498 }
  0xd9   :  { %v1080_v52 = vadd.f32 %v1079_v11, %v1061_v46  ;;  %v1044_v57 = vadd.f32 %v1043_v15, %v1025_v48  ;;  %v1176_v15 = vmul.f32 64.0, %v3499_v14  ;;  %vm1180_vm1 = vweird.f32 %v3499_v14  ;;  %v3440_v46 = vld [vmem:[%s4581_s1 + $0x308] sm:$0xff] }
  0xdb   :  { %v1177_v16 = vsub.f32 1.0, %v1176_v15 }
  0xdd   :  { %v1178_v17 = vmul.f32 %v3499_v14, %v1177_v16 }
  0xde   :  { %v1062_v21 = vpop.f32.mrf.mxu2  ;;  %v1093_v25 = vpop.f32.mrf.mxu0 }
  0xdf   :  { %v1081_v22 = vpop.f32.mrf.mxu3  ;;  %v1112_v26 = vpop.f32.mrf.mxu1  ;;  %v1094_v29 = vadd.f32 %v1093_v25, %v1075_v24  ;;  %v1063_v60 = vadd.f32 %v1062_v21, %v1044_v57  ;;  %v1179_v18 = vadd.f32 %v3499_v14, %v1178_v17 }
  0xe1   :  { %v1113_v34 = vadd.f32 %v1112_v26, %v1094_v29  ;;  %v1082_v0 = vadd.f32 %v1081_v22, %v1063_v60  ;;  %v4052_v19 = vsel %vm1180_vm1, %v3499_v14, %v1179_v18 }
  0xe6   :  { %v1131_v35 = vpop.f32.mrf.mxu2  ;;  %v1095_v40 = vpop.f32.mrf.mxu0 }
  0xe7   :  { %v1150_v36 = vpop.f32.mrf.mxu3  ;;  %v1132_v39 = vadd.f32 %v1131_v35, %v1113_v34  ;;  %v1114_v41 = vpop.f32.mrf.mxu1  ;;  %v1096_v44 = vadd.f32 %v1095_v40, %v1077_v38  ;;  %v3442_v40 = vld [vmem:[%s4581_s1 + $0x318] sm:$0xff] }
  0xe8   :  { %1314 = vmatpush.bf16.msrb.mxu0 %v3442_v40  ;;  %3469 = vmatpush.bf16.msrb.mxu1 %v3442_v40 }
  0xe9   :  { %v1151_v43 = vadd.f32 %v1150_v36, %v1132_v39  ;;  %v1115_v49 = vadd.f32 %v1114_v41, %v1096_v44  ;;  %v1559_v41 = vld [vmem:[%s4584_s3] sm:$0xff] }
  0xea   :  { %v4090_v44 = vadd.f32 %v1561_v42, %v1559_v41 }
  0xeb   :  { %v1163_v47 = vsel %vm1162_vm0, %v1151_v43, 0.0 }
  0xec   :  { %1164 = vadd.xlane.f32.xlu0 %v1163_v47  ;;  %v1575_v45 = vsel %vm1329_vm2, %v4090_v44, 0.0 }
  0xee   :  { %v1133_v50 = vpop.f32.mrf.mxu2  ;;  %v1098_v54 = vpop.f32.mrf.mxu0 }
  0xef   :  { %v1152_v51 = vpop.f32.mrf.mxu3  ;;  %v1134_v53 = vadd.f32 %v1133_v50, %v1115_v49  ;;  %v1117_v56 = vpop.f32.mrf.mxu1  ;;  %v1099_v59 = vadd.f32 %v1098_v54, %v1080_v52  ;;  %v3439_v49 = vld [vmem:[%s4581_s1 + $0x300] sm:$0xff]  ;;  %v1564_v54 = vld [vmem:[%s4583_s2 + $0x30] sm:$0xff] }
  0xf1   :  { %v1153_v58 = vadd.f32 %v1152_v51, %v1134_v53  ;;  %v1118_v55 = vadd.f32 %v1117_v56, %v1099_v59  ;;  %v1560_v53 = vld [vmem:[%s4584_s3 + $0x8] sm:$0xff] }
  0xf2   :  { %v4108_v56 = vadd.f32 %v1564_v54, %v1560_v53 }
  0xf3   :  { %v1166_v61 = vsel %vm1162_vm0, %v1153_v58, 0.0 }
  0xf4   :  { %1167 = vadd.xlane.f32.xlu0 %v1166_v61  ;;  %v1584_v60 = vsel %vm1329_vm2, %v4108_v56, 0.0 }
  0xf6   :  { %v1136_v62 = vpop.f32.mrf.mxu2  ;;  %v1100_v2 = vpop.f32.mrf.mxu0 }
  0xf7   :  { %v1155_v63 = vpop.f32.mrf.mxu3  ;;  %v1137_v1 = vadd.f32 %v1136_v62, %v1118_v55  ;;  %v1101_v3 = vadd.f32 %v1100_v2, %v1082_v0  ;;  %v1119_v5 = vpop.f32.mrf.mxu1 }
  0xf9   :  { %v1156_v4 = vadd.f32 %v1155_v63, %v1137_v1  ;;  %v1120_v7 = vadd.f32 %v1119_v5, %v1101_v3 }
  0xfb   :  { %v1169_v6 = vsel %vm1162_vm0, %v1156_v4, 0.0 }
  0xfc   :  { %1170 = vadd.xlane.f32.xlu1 %v1169_v6 }
  0xfe   :  { %v1138_v8 = vpop.f32.mrf.mxu2 }
  0xff   :  { %v1157_v9 = vpop.f32.mrf.mxu3  ;;  %v1139_v10 = vadd.f32 %v1138_v8, %v1120_v7 }
 0x101   :  { %v1158_v11 = vadd.f32 %v1157_v9, %v1139_v10 }
 0x103   :  { %v1172_v12 = vsel %vm1162_vm0, %v1158_v11, 0.0 }
 0x104   :  { %1173 = vadd.xlane.f32.xlu1 %v1172_v12  ;;  %v3480_v12 = vld [vmem:[%s4583_s2 + $0x1] ss:$0 sm:$0xff] }
 0x15f   :  { %v1165_v20 = vpop.xlane.xlu0 %1164 }
 0x160   :  { %v1182_v21 = vmul.f32 %v4052_v19, %v1165_v20 }
 0x162   :  { %v4055_v22 = vsub.f32 %v1151_v43, %v1182_v21  ;;  %v3441_v43 = vld [vmem:[%s4581_s1 + $0x310] sm:$0xff] }
 0x163   :  { %1315 = vmatpush.bf16.msrb.mxu0 %v3441_v43  ;;  %3470 = vmatpush.bf16.msrb.mxu1 %v3441_v43 }
 0x164   :  { %v1190_v23 = vmul.f32 %v4055_v22, %v4055_v22 }
 0x166   :  { %v1194_v24 = vsel %vm1162_vm0, %v1190_v23, 0.0 }
 0x167   :  { %1195 = vadd.xlane.f32.xlu2 %v1194_v24  ;;  %v1168_v25 = vpop.xlane.xlu0 %1167  ;;  %1316 = vmatpush.bf16.msrb.mxu0 %v3440_v46 }
 0x168   :  { %v1183_v26 = vmul.f32 %v4052_v19, %v1168_v25  ;;  %3471 = vmatpush.bf16.msrb.mxu1 %v3440_v46 }
 0x16a   :  { %v4061_v27 = vsub.f32 %v1153_v58, %v1183_v26 }
 0x16b   :  { %1317 = vmatpush.bf16.msrb.mxu0 %v3439_v49 }
 0x16c   :  { %v1191_v28 = vmul.f32 %v4061_v27, %v4061_v27  ;;  %3472 = vmatpush.bf16.msrb.mxu1 %v3439_v49 }
 0x16e   :  { %v1197_v29 = vsel %vm1162_vm0, %v1191_v28, 0.0 }
 0x16f   :  { %v1171_v30 = vpop.xlane.xlu1 %1170  ;;  %1198 = vadd.xlane.f32.xlu2 %v1197_v29 }
 0x170   :  { %v1184_v31 = vmul.f32 %v4052_v19, %v1171_v30 }
 0x172   :  { %v4067_v32 = vsub.f32 %v1156_v4, %v1184_v31 }
 0x174   :  { %v1192_v33 = vmul.f32 %v4067_v32, %v4067_v32 }
 0x176   :  { %v1200_v34 = vsel %vm1162_vm0, %v1192_v33, 0.0 }
 0x177   :  { %v1174_v35 = vpop.xlane.xlu1 %1173  ;;  %1201 = vadd.xlane.f32.xlu0 %v1200_v34  ;;  %1576 = vadd.xlane.f32.xlu2 %v1575_v45 }
 0x178   :  { %v1185_v36 = vmul.f32 %v4052_v19, %v1174_v35 }
 0x17a   :  { %v4073_v37 = vsub.f32 %v1158_v11, %v1185_v36 }
 0x17c   :  { %v1193_v38 = vmul.f32 %v4073_v37, %v4073_v37 }
 0x17e   :  { %v1203_v39 = vsel %vm1162_vm0, %v1193_v38, 0.0 }
 0x17f   :  { %1204 = vadd.xlane.f32.xlu1 %v1203_v39  ;;  %1585 = vadd.xlane.f32.xlu2 %v1584_v60 }
 0x1da   :  { %v1196_v47 = vpop.xlane.xlu2 %1195 }
 0x1db   :  { %v1206_v48 = vmul.f32 %v1196_v47, %v4052_v19  ;;  %v3585_v47 = vmov 32.0  }
 0x1dd   :  { %v1210_v50 = vadd.f32 1e-05, %v1206_v48 }
 0x1df   :  { %3500 = vrsqrt.f32 %v1210_v50  ;;  %vm1220_vm4 = vweird.f32 %v1210_v50 }
 0x1e2   :  { %v1199_v51 = vpop.xlane.xlu2 %1198 }
 0x1e3   :  { %v1207_v52 = vmul.f32 %v1199_v51, %v4052_v19 }
 0x1e5   :  { %v3501_v57 = vpop.eup %3500  ;;  %v1211_v58 = vadd.f32 1e-05, %v1207_v52 }
 0x1e6   :  { %v1215_v59 = vmul.f32 %v3501_v57, %v1210_v50  ;;  %vm1221_vm3 = vweird.f32 %v3501_v57 }
 0x1e7   :  { %3502 = vrsqrt.f32 %v1211_v58  ;;  %vm1222_vm5 = vmor %vm1220_vm4, %vm1221_vm3  ;;  %vm1230_vm7 = vweird.f32 %v1211_v58  ;;  %vm1357_vm3 = vcmask 1040384  }
 0x1e8   :  { %v1216_v61 = vmul.f32 %v3501_v57, %v1215_v59 }
 0x1ea   :  { %v1217_v55 = vmul.f32 0.5, %v1216_v61  ;;  %v1202_v62 = vpop.xlane.xlu0 %1201  ;;  %v1577_v53 = vpop.xlane.xlu2 %1576 }
 0x1eb   :  { %v1208_v63 = vmul.f32 %v1202_v62, %v4052_v19 }
 0x1ec   :  { %v1218_v0 = vsub.f32 1.5, %v1217_v55 }
 0x1ed   :  { %v3503_v1 = vpop.eup %3502  ;;  %v1212_v2 = vadd.f32 1e-05, %v1208_v63 }
 0x1ee   :  { %v1219_v3 = vmul.f32 %v3501_v57, %v1218_v0  ;;  %v1225_v4 = vmul.f32 %v3503_v1, %v1211_v58  ;;  %vm1231_vm6 = vweird.f32 %v3503_v1  ;;  %v1562_v0 = vld [vmem:[%s4583_s2 + $0x20] sm:$0xff] }
 0x1ef   :  { %3504 = vrsqrt.f32 %v1212_v2  ;;  %vm1232_vm8 = vmor %vm1230_vm7, %vm1231_vm6  ;;  %vm1240_vm10 = vweird.f32 %v1212_v2 }
 0x1f0   :  { %v1226_v5 = vmul.f32 %v3503_v1, %v1225_v4  ;;  %v1223_v6 = vsel %vm1222_vm5, %v3501_v57, %v1219_v3  ;;  %v3444_v3 = vld [vmem:[%s4581_s1 + $0x3c8] sm:$0xff] }
 0x1f1   :  { %v1254_v13 = vmul.f32 %v1223_v6, %v4055_v22  ;;  %1387 = vmatpush.bf16.msra.mxu1 %v3444_v3 }
 0x1f2   :  { %v1227_v7 = vmul.f32 0.5, %v1226_v5  ;;  %v1205_v8 = vpop.xlane.xlu1 %1204  ;;  %v1586_v59 = vpop.xlane.xlu2 %1585  ;;  %v1563_v5 = vld [vmem:[%s4583_s2 + $0x28] sm:$0xff] }
 0x1f3   :  { %v1209_v9 = vmul.f32 %v1205_v8, %v4052_v19  ;;  %v3481_v19 = vld [vmem:[%s4583_s2 + $0x2] ss:$0 sm:$0xff]  ;;  %v1259_v20 = vmul.f32 %v3480_v12, %v1254_v13  ;;  %v3586_v13 = vmov 16.0  }
 0x1f4   :  { %v1228_v10 = vsub.f32 1.5, %v1227_v7  ;;  %v3443_v7 = vld [vmem:[%s4581_s1 + $0x3c0] sm:$0xff] }
 0x1f5   :  { %v3505_v11 = vpop.eup %3504  ;;  %v1213_v14 = vadd.f32 1e-05, %v1209_v9  ;;  %v1264_v22 = vadd.f32 %v3481_v19, %v1259_v20  ;;  %1388 = vmatpush.bf16.msra.mxu1 %v3443_v7 }
 0x1f6   :  { %v1229_v15 = vmul.f32 %v3503_v1, %v1228_v10  ;;  %v1235_v16 = vmul.f32 %v3505_v11, %v1212_v2  ;;  %vm1241_vm9 = vweird.f32 %v3505_v11 }
 0x1f7   :  { %3506 = vrsqrt.f32 %v1213_v14  ;;  %vm1242_vm11 = vmor %vm1240_vm10, %vm1241_vm9  ;;  %vm1250_vm13 = vweird.f32 %v1213_v14 }
 0x1f8   :  { %v1233_v17 = vsel %vm1232_vm8, %v3503_v1, %v1229_v15  ;;  %v1236_v18 = vmul.f32 %v3505_v11, %v1235_v16  ;;  %3508 = vrcp.f32 %v3585_v47  ;;  %v1565_v15 = vld [vmem:[%s4583_s2 + $0x38] sm:$0xff] }
 0x1f9   :  { %v1255_v21 = vmul.f32 %v1233_v17, %v4061_v27  ;;  %3510 = vrcp.f32 %v3586_v13 }
 0x1fa   :  { %v1237_v23 = vmul.f32 0.5, %v1236_v18 }
 0x1fb   :  { %v1260_v24 = vmul.f32 %v3480_v12, %v1255_v21 }
 0x1fc   :  { %v1238_v25 = vsub.f32 1.5, %v1237_v23 }
 0x1fd   :  { %v3507_v26 = vpop.eup %3506  ;;  %v1265_v28 = vadd.f32 %v3481_v19, %v1260_v24 }
 0x1fe   :  { %v1239_v29 = vmul.f32 %v3505_v11, %v1238_v25  ;;  %v1245_v30 = vmul.f32 %v3507_v26, %v1213_v14  ;;  %vm1251_vm12 = vweird.f32 %v3507_v26  ;;  %v3509_v48 = vpop.eup %3508  ;;  %v1566_v25 = vld [vmem:[%s4583_s2 + $0x40] sm:$0xff] }
 0x1ff   :  { %v1268_v31 = vpack.c.bf16 %v1265_v28, %v1264_v22  ;;  %vm1252_vm14 = vmor %vm1250_vm13, %vm1251_vm12  ;;  %v1594_v49 = vmul.f32 32.0, %v3509_v48  ;;  %vm1598_vm15 = vweird.f32 %v3509_v48 }
 0x200   :  { %v1246_v33 = vmul.f32 %v3507_v26, %v1245_v30  ;;  %v1243_v34 = vsel %vm1242_vm11, %v3505_v11, %v1239_v29 }
 0x201   :  { %3181 = vmatmul.msk.bf16.vlgmr.msrb.gmra.mxu0 %vm1162_vm0, %v1268_v31  ;;  %v1256_v27 = vmul.f32 %v1243_v34, %v4067_v32  ;;  %v1595_v50 = vsub.f32 1.0, %v1594_v49 }
 0x202   :  { %v1247_v35 = vmul.f32 0.5, %v1246_v33 }
 0x203   :  { %v1261_v40 = vmul.f32 %v3480_v12, %v1256_v27  ;;  %v1596_v51 = vmul.f32 %v3509_v48, %v1595_v50 }
 0x204   :  { %v1248_v36 = vsub.f32 1.5, %v1247_v35 }
 0x205   :  { %v1266_v43 = vadd.f32 %v3481_v19, %v1261_v40  ;;  %v1597_v32 = vadd.f32 %v3509_v48, %v1596_v51 }
 0x206   :  { %v1249_v38 = vmul.f32 %v3507_v26, %v1248_v36 }
 0x207   :  { %v4126_v52 = vsel %vm1598_vm15, %v3509_v48, %v1597_v32 }
 0x208   :  { %v1253_v39 = vsel %vm1252_vm14, %v3507_v26, %v1249_v38  ;;  %v1600_v54 = vmul.f32 %v4126_v52, %v1577_v53  ;;  %v1603_v60 = vmul.f32 %v4126_v52, %v1586_v59  ;;  %v3448_v53 = vld [vmem:[%s4581_s1 + $0x3e8] sm:$0xff] }
 0x209   :  { %v1257_v41 = vmul.f32 %v1253_v39, %v4073_v37  ;;  %1437 = vmatpush.bf16.msrb.mxu2 %v3448_v53 }
 0x20a   :  { %v4130_v37 = vsub.f32 %v4090_v44, %v1600_v54  ;;  %v4137_v61 = vsub.f32 %v4108_v56, %v1603_v60  ;;  %v3482_v44 = vld [vmem:[%s4583_s2 + $0x3] ss:$0 sm:$0xff] }
 0x20b   :  { %v1262_v42 = vmul.f32 %v3480_v12, %v1257_v41 }
 0x20c   :  { %v1612_v57 = vmul.f32 %v4130_v37, %v4130_v37  ;;  %v1615_v55 = vmul.f32 %v4137_v61, %v4137_v61 }
 0x20d   :  { %v1267_v45 = vadd.f32 %v3481_v19, %v1262_v42  ;;  %v3511_v19 = vpop.eup %3510 }
 0x20e   :  { %v1618_v58 = vsel %vm1329_vm2, %v1612_v57, 0.0  ;;  %v1627_v62 = vsel %vm1329_vm2, %v1615_v55, 0.0  ;;  %v1340_v23 = vmul.f32 16.0, %v3511_v19  ;;  %vm1344_vm1 = vweird.f32 %v3511_v19  ;;  %v3447_v57 = vld [vmem:[%s4581_s1 + $0x3e0] sm:$0xff] }
 0x20f   :  { %v1269_v46 = vpack.c.bf16 %v1267_v45, %v1266_v43  ;;  %1619 = vadd.xlane.f32.xlu2 %v1618_v58  ;;  %1438 = vmatpush.bf16.msrb.mxu2 %v3447_v57 }
 0x210   :  { %v1341_v28 = vsub.f32 1.0, %v1340_v23  ;;  %v3452_v23 = vld [vmem:[%s4581_s1 + $0x338] sm:$0xff] }
 0x211   :  { %3182 = vmatmul.msk.bf16.vlgmr.msrb.gmra.mxu1 %vm1162_vm0, %v1269_v46 }
 0x212   :  { %v1342_v27 = vmul.f32 %v3511_v19, %v1341_v28  ;;  %1806 = vmatpush.bf16.msrb.mxu1 %v3452_v23  ;;  %v3451_v28 = vld [vmem:[%s4581_s1 + $0x330] sm:$0xff] }
 0x214   :  { %v1343_v41 = vadd.f32 %v3511_v19, %v1342_v27 }
 0x216   :  { %v1345_v46 = vsel %vm1344_vm1, %v3511_v19, %v1343_v41  ;;  %1807 = vmatpush.bf16.msrb.mxu1 %v3451_v28 }
 0x217   :  { %1628 = vadd.xlane.f32.xlu2 %v1627_v62 }
 0x27e   :  { %v1319_v63 = vpop.f32.mrf.mxu0 }
 0x27f   :  { %v1320_v1 = vadd.f32 %v3482_v44, %v1319_v63 }
 0x281   :  { %v4148_v2 = vadd.f32 %v1562_v0, %v1320_v1  ;;  %v1330_v10 = vsel %vm1329_vm2, %v1320_v1, 0.0 }
 0x283   :  { %v1578_v56 = vsel %vm1329_vm2, %v4148_v2, 0.0 }
 0x284   :  { %1579 = vadd.xlane.f32.xlu0 %v1578_v56  ;;  %v3446_v56 = vld [vmem:[%s4581_s1 + $0x3d8] sm:$0xff] }
 0x285   :  { %1439 = vmatpush.bf16.msrb.mxu2 %v3446_v56 }
 0x286   :  { %v1321_v4 = vpop.f32.mrf.mxu0 }
 0x287   :  { %v1322_v6 = vadd.f32 %v3482_v44, %v1321_v4 }
 0x289   :  { %v1331_v8 = vsel %vm1329_vm2, %v1322_v6, 0.0  ;;  %v1569_v9 = vadd.f32 %v1563_v5, %v1322_v6  ;;  %v3445_v5 = vld [vmem:[%s4581_s1 + $0x3d0] sm:$0xff] }
 0x28a   :  { %v1332_v12 = vadd.f32 %v1331_v8, %v1330_v10  ;;  %1440 = vmatpush.bf16.msrb.mxu2 %v3445_v5 }
 0x28b   :  { %v1581_v11 = vsel %vm1329_vm2, %v1569_v9, 0.0 }
 0x28c   :  { %1582 = vadd.xlane.f32.xlu1 %v1581_v11  ;;  %v1333_v17 = vrot.slane %v1332_v12, 4 }
 0x28e   :  { %v1324_v14 = vpop.f32.mrf.mxu1  ;;  %v1334_v21 = vadd.f32 %v1333_v17, %v1332_v12  ;;  %v3485_v12 = vld [vmem:[%s4583_s2 + $0x11] ss:$0 sm:$0xff] }
 0x28f   :  { %v1325_v16 = vadd.f32 %v3482_v44, %v1324_v14 }
 0x290   :  { %v1335_v22 = vrot.slane %v1334_v21, 2 }
 0x291   :  { %v1571_v18 = vadd.f32 %v1565_v15, %v1325_v16  ;;  %v1347_v29 = vsel %vm1329_vm2, %v1325_v16, 0.0 }
 0x292   :  { %v1336_v35 = vadd.f32 %v1335_v22, %v1334_v21  ;;  %v3450_v21 = vld [vmem:[%s4581_s1 + $0x328] sm:$0xff]  ;;  %v3449_v22 = vld [vmem:[%s4581_s1 + $0x320] sm:$0xff] }
 0x293   :  { %v1587_v20 = vsel %vm1329_vm2, %v1571_v18, 0.0  ;;  %1764 = vmatpush.bf16.msrb.mxu3 %v3450_v21 }
 0x294   :  { %1588 = vadd.xlane.f32.xlu0 %v1587_v20  ;;  %v1337_v39 = vrot.slane %v1336_v35, 1 }
 0x296   :  { %v1326_v24 = vpop.f32.mrf.mxu1  ;;  %v1338_v43 = vadd.f32 %v1337_v39, %v1336_v35 }
 0x297   :  { %v1327_v26 = vadd.f32 %v3482_v44, %v1326_v24  ;;  %v3454_v24 = vld [vmem:[%s4581_s1 + $0x348] sm:$0xff]  ;;  %1765 = vmatpush.bf16.msrb.mxu3 %v3449_v22 }
 0x298   :  { %v1346_v48 = vmul.f32 %v1345_v46, %v1338_v43  ;;  %1848 = vmatpush.bf16.msra.mxu2 %v3454_v24 }
 0x299   :  { %v1348_v30 = vsel %vm1329_vm2, %v1327_v26, 0.0  ;;  %v1572_v31 = vadd.f32 %v1566_v25, %v1327_v26 }
 0x29a   :  { %v1349_v33 = vadd.f32 %v1348_v30, %v1347_v29  ;;  %v3453_v29 = vld [vmem:[%s4581_s1 + $0x340] sm:$0xff] }
 0x29b   :  { %v1590_v34 = vsel %vm1329_vm2, %v1572_v31, 0.0 }
 0x29c   :  { %v1350_v36 = vrot.slane %v1349_v33, 4  ;;  %1591 = vadd.xlane.f32.xlu1 %v1590_v34  ;;  %1849 = vmatpush.bf16.msra.mxu2 %v3453_v29 }
 0x29e   :  { %v1351_v38 = vadd.f32 %v1350_v36, %v1349_v33 }
 0x2a0   :  { %v1352_v40 = vrot.slane %v1351_v38, 2 }
 0x2a2   :  { %v1353_v42 = vadd.f32 %v1352_v40, %v1351_v38 }
 0x2a4   :  { %v1354_v45 = vrot.slane %v1353_v42, 1 }
 0x2a6   :  { %v1355_v47 = vadd.f32 %v1354_v45, %v1353_v42 }
 0x2a8   :  { %v1356_v49 = vmul.f32 %v1355_v47, %v1345_v46 }
 0x2aa   :  { %v1358_v50 = vsel %vm1357_vm3, %v1346_v48, %v1356_v49 }
 0x2ab   :  { %v1359_v51 = vpack.c.bf16 %v1358_v50, %v1358_v50 }
 0x2ad   :  { %3191 = vmatmul.msk.bf16.vlgmr.msra.gmra.mxu1 %vm1329_vm2, %v1359_v51 }
 0x2f7   :  { %v1580_v32 = vpop.xlane.xlu0 %1579 }
 0x2f8   :  { %v1601_v54 = vmul.f32 %v4126_v52, %v1580_v32 }
 0x2fa   :  { %v4183_v58 = vsub.f32 %v4148_v2, %v1601_v54 }
 0x2fc   :  { %v1613_v59 = vmul.f32 %v4183_v58, %v4183_v58 }
 0x2fe   :  { %v1621_v60 = vsel %vm1329_vm2, %v1613_v59, 0.0 }
 0x2ff   :  { %v1583_v55 = vpop.xlane.xlu1 %1582  ;;  %1622 = vadd.xlane.f32.xlu0 %v1621_v60  ;;  %v4246_v60 = vld [vmem:[%s4583_s2 + $0x4] ss:$0 sm:$0xff] }
 0x300   :  { %v1602_v62 = vmul.f32 %v4126_v52, %v1583_v55 }
 0x302   :  { %v4189_v44 = vsub.f32 %v1569_v9, %v1602_v62 }
 0x304   :  { %v1614_v63 = vmul.f32 %v4189_v44, %v4189_v44 }
 0x306   :  { %v1624_v0 = vsel %vm1329_vm2, %v1614_v63, 0.0 }
 0x307   :  { %1625 = vadd.xlane.f32.xlu1 %v1624_v0  ;;  %v1589_v1 = vpop.xlane.xlu0 %1588 }
 0x308   :  { %v1604_v2 = vmul.f32 %v4126_v52, %v1589_v1 }
 0x30a   :  { %v4198_v3 = vsub.f32 %v1571_v18, %v1604_v2  ;;  %v1620_v18 = vpop.xlane.xlu2 %1619 }
 0x30b   :  { %v1636_v19 = vmul.f32 %v1620_v18, %v4126_v52 }
 0x30c   :  { %v1616_v4 = vmul.f32 %v4198_v3, %v4198_v3 }
 0x30d   :  { %v1642_v20 = vadd.f32 1e-12, %v1636_v19 }
 0x30e   :  { %v1630_v6 = vsel %vm1329_vm2, %v1616_v4, 0.0  ;;  %v3484_v4 = vld [vmem:[%s4583_s2 + $0x5] ss:$0 sm:$0xff] }
 0x30f   :  { %v1592_v7 = vpop.xlane.xlu1 %1591  ;;  %1631 = vadd.xlane.f32.xlu0 %v1630_v6  ;;  %3512 = vrsqrt.f32 %v1642_v20 }
 0x310   :  { %v1605_v8 = vmul.f32 %v4126_v52, %v1592_v7 }
 0x312   :  { %v4207_v9 = vsub.f32 %v1572_v31, %v1605_v8  ;;  %v1629_v25 = vpop.xlane.xlu2 %1628 }
 0x313   :  { %v1639_v30 = vmul.f32 %v1629_v25, %v4126_v52 }
 0x314   :  { %v1617_v10 = vmul.f32 %v4207_v9, %v4207_v9 }
 0x315   :  { %v3513_v26 = vpop.eup %3512  ;;  %v1645_v33 = vadd.f32 1e-12, %v1639_v30 }
 0x316   :  { %v1633_v11 = vsel %vm1329_vm2, %v1617_v10, 0.0  ;;  %v1649_v31 = vmul.f32 %v3513_v26, %v1642_v20  ;;  %vm1655_vm4 = vweird.f32 %v3513_v26 }
 0x317   :  { %1634 = vadd.xlane.f32.xlu1 %v1633_v11  ;;  %3514 = vrsqrt.f32 %v1645_v33  ;;  %vm1684_vm9 = vweird.f32 %v1645_v33 }
 0x318   :  { %v1650_v34 = vmul.f32 %v3513_v26, %v1649_v31 }
 0x31a   :  { %v1651_v38 = vmul.f32 0.5, %v1650_v34 }
 0x31c   :  { %v1652_v39 = vsub.f32 1.5, %v1651_v38 }
 0x31d   :  { %v4237_v41 = vpop.eup %3514 }
 0x31e   :  { %v1653_v46 = vmul.f32 %v3513_v26, %v1652_v39  ;;  %v1679_v47 = vmul.f32 %v4237_v41, %v1645_v33  ;;  %vm1685_vm10 = vweird.f32 %v4237_v41 }
 0x31f   :  { %vm1686_vm12 = vmor %vm1684_vm9, %vm1685_vm10 }
 0x320   :  { %v1680_v51 = vmul.f32 %v4237_v41, %v1679_v47 }
 0x322   :  { %v1681_v63 = vmul.f32 0.5, %v1680_v51 }
 0x324   :  { %v1682_v7 = vsub.f32 1.5, %v1681_v63 }
 0x32a   :  { %v1390_v13 = vpop.f32.mrf.mxu1 }
 0x32b   :  { %v1391_v14 = vadd.f32 %v3485_v12, %v1390_v13 }
 0x32d   :  { %v1394_v15 = vmax.f32 %v1391_v14, 0.0 }
 0x32f   :  { %v1395_v16 = vpack.c.bf16 %v1394_v15, %v1394_v15 }
 0x331   :  { %3208 = vmatmul.msk.bf16.vlgmr.msrb.gmra.mxu2 %vm1162_vm0, %v1395_v16  ;;  %vm1654_vm0 = vweird.f32 %v1642_v20 }
 0x332   :  { %v1392_v17 = vpop.f32.mrf.mxu1  ;;  %vm1656_vm5 = vmor %vm1654_vm0, %vm1655_vm4 }
 0x333   :  { %v1657_v50 = vsel %vm1656_vm5, %v3513_v26, %v1653_v46 }
 0x334   :  { %v1708_v55 = vmul.f32 %v1657_v50, %v4130_v37 }
 0x336   :  { %v1715_v5 = vmul.f32 %v4246_v60, %v1708_v55 }
 0x338   :  { %v4257_v14 = vadd.f32 %v3484_v4, %v1715_v5 }
 0x372   :  { %v1623_v35 = vpop.xlane.xlu0 %1622 }
 0x373   :  { %v1637_v36 = vmul.f32 %v1623_v35, %v4126_v52 }
 0x375   :  { %v1643_v27 = vadd.f32 1e-12, %v1637_v36 }
 0x377   :  { %3516 = vrsqrt.f32 %v1643_v27  ;;  %vm1664_vm7 = vweird.f32 %v1643_v27 }
 0x37a   :  { %v1626_v40 = vpop.xlane.xlu1 %1625 }
 0x37b   :  { %v1638_v42 = vmul.f32 %v1626_v40, %v4126_v52 }
 0x37d   :  { %v3517_v43 = vpop.eup %3516  ;;  %v1644_v45 = vadd.f32 1e-12, %v1638_v42 }
 0x37e   :  { %v1659_v48 = vmul.f32 %v3517_v43, %v1643_v27  ;;  %vm1665_vm6 = vweird.f32 %v3517_v43 }
 0x37f   :  { %3518 = vrsqrt.f32 %v1644_v45  ;;  %vm1666_vm8 = vmor %vm1664_vm7, %vm1665_vm6  ;;  %vm1674_vm13 = vweird.f32 %v1644_v45  ;;  %vm2113_vm6 = vcmask 1043456  }
 0x380   :  { %v1660_v49 = vmul.f32 %v3517_v43, %v1659_v48 }
 0x382   :  { %v1661_v32 = vmul.f32 0.5, %v1660_v49  ;;  %v1632_v53 = vpop.xlane.xlu0 %1631 }
 0x383   :  { %v1640_v54 = vmul.f32 %v1632_v53, %v4126_v52 }
 0x384   :  { %v1662_v57 = vsub.f32 1.5, %v1661_v32 }
 0x385   :  { %v3519_v59 = vpop.eup %3518  ;;  %v1646_v62 = vadd.f32 1e-12, %v1640_v54 }
 0x386   :  { %v1663_v0 = vmul.f32 %v3517_v43, %v1662_v57  ;;  %v1669_v1 = vmul.f32 %v3519_v59, %v1644_v45  ;;  %vm1675_vm11 = vweird.f32 %v3519_v59  ;;  %v3487_v57 = vld [vmem:[%s4583_s2 + $0x7] ss:$0 sm:$0xff] }
 0x387   :  { %3520 = vrsqrt.f32 %v1646_v62  ;;  %vm1676_vm14 = vmor %vm1674_vm13, %vm1675_vm11  ;;  %vm1694_vm4 = vweird.f32 %v1646_v62 }
 0x388   :  { %v1667_v2 = vsel %vm1666_vm8, %v3517_v43, %v1663_v0  ;;  %v1670_v56 = vmul.f32 %v3519_v59, %v1669_v1 }
 0x389   :  { %v1709_v6 = vmul.f32 %v1667_v2, %v4183_v58  ;;  %v1683_v58 = vmul.f32 %v4237_v41, %v1682_v7 }
 0x38a   :  { %v1671_v8 = vmul.f32 0.5, %v1670_v56  ;;  %v1635_v37 = vpop.xlane.xlu1 %1634 }
 0x38b   :  { %v1716_v10 = vmul.f32 %v4246_v60, %v1709_v6  ;;  %v1641_v11 = vmul.f32 %v1635_v37, %v4126_v52  ;;  %v1687_v21 = vsel %vm1686_vm12, %v4237_v41, %v1683_v58 }
 0x38c   :  { %v1672_v12 = vsub.f32 1.5, %v1671_v8  ;;  %v1711_v26 = vmul.f32 %v1687_v21, %v4137_v61 }
 0x38d   :  { %v3521_v13 = vpop.eup %3520  ;;  %v4259_v15 = vadd.f32 %v3484_v4, %v1716_v10  ;;  %v1647_v16 = vadd.f32 1e-12, %v1641_v11  ;;  %v4309_v10 = vld [vmem:[%s4583_s2 + $0x6] ss:$0 sm:$0xff] }
 0x38e   :  { %v1673_v17 = vmul.f32 %v3519_v59, %v1672_v12  ;;  %v1689_v18 = vmul.f32 %v3521_v13, %v1646_v62  ;;  %v1718_v31 = vmul.f32 %v4246_v60, %v1711_v26  ;;  %vm1695_vm1 = vweird.f32 %v3521_v13 }
 0x38f   :  { %3522 = vrsqrt.f32 %v1647_v16  ;;  %v1728_v19 = vpack.c.bf16 %v4259_v15, %v4257_v14  ;;  %vm1704_vm3 = vweird.f32 %v1647_v16  ;;  %vm1696_vm5 = vmor %vm1694_vm4, %vm1695_vm1 }
 0x390   :  { %v1677_v20 = vsel %vm1676_vm14, %v3519_v59, %v1673_v17  ;;  %v1690_v23 = vmul.f32 %v3521_v13, %v1689_v18  ;;  %v4274_v27 = vadd.f32 %v3484_v4, %v1718_v31 }
 0x391   :  { %3223 = vmatmul.msk.bf16.vlgmr.msrb.gmra.mxu3 %vm1329_vm2, %v1728_v19  ;;  %3234 = vmatmul.msk.bf16.vlgmr.msrb.gmra.mxu1 %vm1329_vm2, %v1728_v19  ;;  %v1710_v24 = vmul.f32 %v1677_v20, %v4189_v44 }
 0x392   :  { %3245 = vmatmul.msk.bf16.vlgmr.msra.gmra.mxu2 %vm1329_vm2, %v1728_v19  ;;  %v1691_v22 = vmul.f32 0.5, %v1690_v23 }
 0x393   :  { %v1717_v29 = vmul.f32 %v4246_v60, %v1710_v24 }
 0x394   :  { %v1692_v33 = vsub.f32 1.5, %v1691_v22 }
 0x395   :  { %v3523_v25 = vpop.eup %3522  ;;  %v4272_v35 = vadd.f32 %v3484_v4, %v1717_v29 }
 0x396   :  { %v1699_v28 = vmul.f32 %v3523_v25, %v1647_v16  ;;  %vm1705_vm15 = vweird.f32 %v3523_v25  ;;  %v1693_v38 = vmul.f32 %v3521_v13, %v1692_v33 }
 0x397   :  { %vm1706_vm0 = vmor %vm1704_vm3, %vm1705_vm15  ;;  %v1729_v61 = vpack.c.bf16 %v4274_v27, %v4272_v35 }
 0x398   :  { %v1700_v30 = vmul.f32 %v3523_v25, %v1699_v28  ;;  %v1697_v40 = vsel %vm1696_vm5, %v3521_v13, %v1693_v38 }
 0x399   :  { %v1712_v42 = vmul.f32 %v1697_v40, %v4198_v3 }
 0x39a   :  { %v1701_v34 = vmul.f32 0.5, %v1700_v30 }
 0x39b   :  { %v1719_v45 = vmul.f32 %v4246_v60, %v1712_v42 }
 0x39c   :  { %v1702_v36 = vsub.f32 1.5, %v1701_v34 }
 0x39d   :  { %v4287_v47 = vadd.f32 %v3484_v4, %v1719_v45 }
 0x39e   :  { %v1703_v44 = vmul.f32 %v3523_v25, %v1702_v36 }
 0x3a0   :  { %v1707_v39 = vsel %vm1706_vm0, %v3523_v25, %v1703_v44 }
 0x3a1   :  { %3224 = vmatmul.msk.bf16.gmra.mxu3 %vm1329_vm2, %v1729_v61  ;;  %3235 = vmatmul.msk.bf16.gmra.mxu1 %vm1329_vm2, %v1729_v61  ;;  %v1713_v41 = vmul.f32 %v1707_v39, %v4207_v9  ;;  %v3486_v9 = vld [vmem:[%s4583_s2 + $0x12] ss:$0 sm:$0xff] }
 0x3a2   :  { %3246 = vmatmul.msk.bf16.gmra.mxu2 %vm1329_vm2, %v1729_v61 }
 0x3a3   :  { %v1720_v43 = vmul.f32 %v4246_v60, %v1713_v41 }
 0x3a5   :  { %v4285_v46 = vadd.f32 %v3484_v4, %v1720_v43  ;;  %v3489_v4 = vld [vmem:[%s4583_s2 + $0x8] ss:$0 sm:$0xff] }
 0x3a7   :  { %v1730_v48 = vpack.c.bf16 %v4285_v46, %v4287_v47 }
 0x3b1   :  { %3225 = vmatmul.msk.bf16.gmra.mxu3 %vm1329_vm2, %v1730_v48  ;;  %3236 = vmatmul.msk.bf16.gmra.mxu1 %vm1329_vm2, %v1730_v48 }
 0x3b2   :  { %3247 = vmatmul.msk.bf16.gmra.mxu2 %vm1329_vm2, %v1730_v48 }
 0x3b4   :  { %v1442_v3 = vpop.f32.mrf.mxu2 }
 0x3b5   :  { %v1443_v49 = vadd.f32 %v3486_v9, %v1442_v3 }
 0x3b7   :  { %2676 = vst [vmem:[%s4585_s4 + $0x10] sm:$0x3] %v1443_v49 }
 0x3bc   :  { %v1444_v50 = vpop.f32.mrf.mxu2 }
 0x40e   :  { %v1809_v51 = vpop.f32.mrf.mxu1 }
 0x40f   :  { %v1810_v0 = vadd.f32 %v3487_v57, %v1809_v51 }
 0x411   :  { %v1872_v5 = vpack.c.bf16 %v1810_v0, %v1810_v0 }
 0x413   :  { %v1895_v58 = vunpack.c.l.b16 %v1872_v5 }
 0x414   :  { %v1767_v53 = vpop.f32.mrf.mxu3 }
 0x415   :  { %v1851_v32 = vpop.f32.mrf.mxu2  ;;  %v1768_v21 = vadd.f32 %v4309_v10, %v1767_v53 }
 0x416   :  { %v1811_v54 = vpop.f32.mrf.mxu1  ;;  %v1852_v17 = vadd.f32 %v3489_v4, %v1851_v32 }
 0x417   :  { %v1812_v55 = vadd.f32 %v3487_v57, %v1811_v54  ;;  %v1866_v30 = vpack.c.bf16 %v1768_v21, %v1768_v21 }
 0x418   :  { %v1878_v26 = vpack.c.bf16 %v1852_v17, %v1852_v17 }
 0x419   :  { %v1873_v2 = vpack.c.bf16 %v1812_v55, %v1812_v55  ;;  %v1887_v44 = vunpack.c.l.b16 %v1866_v30 }
 0x41a   :  { %v2101_v36 = vunpack.c.l.b16 %v1878_v26 }
 0x41b   :  { %v1896_v11 = vunpack.c.l.b16 %v1873_v2 }
 0x41c   :  { %v1769_v63 = vpop.f32.mrf.mxu3 }
 0x41d   :  { %v1853_v59 = vpop.f32.mrf.mxu2  ;;  %v1770_v18 = vadd.f32 %v4309_v10, %v1769_v63  ;;  %v1898_v23 = vpack.c.b16 %v1896_v11, %v1895_v58 }
 0x41e   :  { %v1814_v60 = vpop.f32.mrf.mxu1  ;;  %v1854_v12 = vadd.f32 %v3489_v4, %v1853_v59 }
 0x41f   :  { %v1815_v62 = vadd.f32 %v3487_v57, %v1814_v60  ;;  %v1867_v22 = vpack.c.bf16 %v1770_v18, %v1770_v18  ;;  %v1907_v33 = vsel %vm1329_vm2, %v1898_v23, 0 }
 0x420   :  { %v1879_v24 = vpack.c.bf16 %v1854_v12, %v1854_v12 }
 0x421   :  { %v1874_v1 = vpack.c.bf16 %v1815_v62, %v1815_v62  ;;  %v1888_v38 = vunpack.c.l.b16 %v1867_v22 }
 0x422   :  { %v2102_v31 = vunpack.c.l.b16 %v1879_v24 }
 0x423   :  { %v1897_v56 = vunpack.c.l.b16 %v1874_v1  ;;  %v1890_v40 = vpack.c.b16 %v1888_v38, %v1887_v44 }
 0x424   :  { %v1772_v19 = vpop.f32.mrf.mxu3  ;;  %v2104_v61 = vpack.c.b16 %v2102_v31, %v2101_v36  ;;  %v1448_v31 = vld [vmem:[%s4583_s2 + $0x58] sm:$0xff] }
 0x425   :  { %v1899_v6 = vpack.c.b16 %v1897_v56, %v1897_v56  ;;  %v1856_v7 = vpop.f32.mrf.mxu2  ;;  %v1773_v48 = vadd.f32 %v4309_v10, %v1772_v19 }
 0x426   :  { %v1857_v8 = vadd.f32 %v3489_v4, %v1856_v7  ;;  %v1816_v37 = vpop.f32.mrf.mxu1 }
 0x427   :  { %v1910_v13 = vsel %vm1329_vm2, %v1899_v6, 0  ;;  %v1817_v9 = vadd.f32 %v3487_v57, %v1816_v37  ;;  %v1868_v51 = vpack.c.bf16 %v1773_v48, %v1773_v48 }
 0x428   :  { %v1880_v16 = vpack.c.bf16 %v1857_v8, %v1857_v8  ;;  %1918 = vmatpush.bf16.xpose.msra.mxu0 %v1910_v13 }
 0x429   :  { %v1875_v32 = vpack.c.bf16 %v1817_v9, %v1817_v9  ;;  %v1889_v2 = vunpack.c.l.b16 %v1868_v51 }
 0x42a   :  { %v2103_v20 = vunpack.c.l.b16 %v1880_v16 }
 0x42b   :  { %v1941_v56 = vunpack.c.l.b16 %v1875_v32  ;;  %v1891_v12 = vpack.c.b16 %v1889_v2, %v1889_v2 }
 0x42c   :  { %v2105_v25 = vpack.c.b16 %v2103_v20, %v2103_v20  ;;  %v1774_v39 = vpop.f32.mrf.mxu3 }
 0x42d   :  { %v1858_v28 = vpop.f32.mrf.mxu2  ;;  %v1775_v7 = vadd.f32 %v4309_v10, %v1774_v39  ;;  %v3587_v39 = vmov 0.0  }
 0x42e   :  { %v1819_v29 = vpop.f32.mrf.mxu1  ;;  %v2115_v34 = vsel %vm2113_vm6, %v2105_v25, 0  ;;  %v1859_v62 = vadd.f32 %v3489_v4, %v1858_v28  ;;  %2680 = vst [vmem:[%s4585_s4 + $0x13] sm:$0x1f] %v3587_v39 }
 0x42f   :  { %v1820_v43 = vadd.f32 %v3487_v57, %v1819_v29  ;;  %v1869_v58 = vpack.c.bf16 %v1775_v7, %v1775_v7  ;;  %v1447_v29 = vld [vmem:[%s4583_s2 + $0x50] sm:$0xff] }
 0x430   :  { %1919 = vmatpush.bf16.xpose.msra.mxu0 %v1907_v33  ;;  %v1881_v8 = vpack.c.bf16 %v1859_v62, %v1859_v62  ;;  %v3210_v30 = vmul.f32 -1.442695, %v1447_v29  ;;  %v3211_v33 = vmul.f32 -1.442695, %v1448_v31  ;;  %v1987_v29 = vld [vmem:[%s4584_s3 + $0x38] sm:$0xff] }
 0x431   :  { %v1876_v49 = vpack.c.bf16 %v1820_v43, %v1820_v43  ;;  %v1933_v21 = vunpack.c.l.b16 %v1869_v58 }
 0x432   :  { %v2146_v17 = vunpack.c.l.b16 %v1881_v8  ;;  %3524 = vpow2.f32 %v3210_v30  ;;  %v1983_v8 = vld [vmem:[%s4584_s3 + $0x18] sm:$0xff] }
 0x433   :  { %v1942_v63 = vunpack.c.l.b16 %v1876_v49  ;;  %3526 = vpow2.f32 %v3211_v33 }
 0x434   :  { %v1777_v60 = vpop.f32.mrf.mxu3 }
 0x435   :  { %v1861_v41 = vpop.f32.mrf.mxu2  ;;  %v1944_v37 = vpack.c.b16 %v1942_v63, %v1941_v56 }
 0x436   :  { %v1821_v42 = vpop.f32.mrf.mxu1  ;;  %v1862_v53 = vadd.f32 %v3489_v4, %v1861_v41  ;;  %v1506_v41 = vlaneseq }
 0x437   :  { %v1822_v45 = vadd.f32 %v3487_v57, %v1821_v42  ;;  %3248 = vmatmul.msk.bf16.vlgmr.msra.gmra.mxu0 %vm1329_vm2, %v1890_v40  ;;  %v1778_v57 = vadd.f32 %v4309_v10, %v1777_v60  ;;  %v1953_v18 = vsel %vm1329_vm2, %v1944_v37, 0 }
 0x438   :  { %2123 = vmatpush.bf16.msrb.mxu0 %v2115_v34  ;;  %v1882_v5 = vpack.c.bf16 %v1862_v53, %v1862_v53  ;;  %v3525_v34 = vpop.eup %3524  ;;  %v4336_v51 = vand.u32 127, %v1506_v41 }
 0x439   :  { %v1877_v3 = vpack.c.bf16 %v1822_v45, %v1822_v45  ;;  %v1870_v13 = vpack.c.bf16 %v1778_v57, %v1778_v57  ;;  %v1459_v36 = vadd.f32 1.0, %v3525_v34  ;;  %v1507_v45 = vshrl.u32 %v1506_v41, 7 }
 0x43a   :  { %v2147_v16 = vunpack.c.l.b16 %v1882_v5  ;;  %vm1515_vm11 = vcmp.ge.s32.totalorder %v4336_v51, 8 }
 0x43b   :  { %v1943_v50 = vunpack.c.l.b16 %v1877_v3  ;;  %v1934_v19 = vunpack.c.l.b16 %v1870_v13  ;;  %3528 = vrcp.f32 %v1459_v36  ;;  %vm1481_vm7 = vweird.f32 %v1459_v36 }
 0x43c   :  { %2124 = vmatpush.bf16.msrb.mxu0 %v2104_v61  ;;  %v2149_v20 = vpack.c.b16 %v2147_v16, %v2146_v17  ;;  %v1779_v24 = vpop.f32.mrf.mxu3  ;;  %v1487_v3 = vand.u32 2147483648, %v1459_v36  ;;  %v1485_v49 = vand.u32 2147483647, %v1459_v36 }
 0x43d   :  { %v1945_v54 = vpack.c.b16 %v1943_v50, %v1943_v50  ;;  %v1863_v59 = vpop.f32.mrf.mxu2  ;;  %v1936_v23 = vpack.c.b16 %v1934_v19, %v1933_v21  ;;  %v1780_v25 = vadd.f32 %v4309_v10, %v1779_v24  ;;  %v3527_v10 = vpop.eup %3526  ;;  %v1508_v50 = vadd.s32 8, %v1507_v45  ;;  %v1984_v21 = vld [vmem:[%s4584_s3 + $0x20] sm:$0xff] }
 0x43e   :  { %v1864_v55 = vadd.f32 %v3489_v4, %v1863_v59  ;;  %v1460_v38 = vadd.f32 1.0, %v3527_v10  ;;  %vm1486_vm10 = vcmp.eq.f32.partialorder %v1485_v49, 8.507059e+37 }
 0x43f   :  { %v1956_v0 = vsel %vm1329_vm2, %v1945_v54, 0  ;;  %v1871_v26 = vpack.c.bf16 %v1780_v25, %v1780_v25  ;;  %v1488_v54 = vor.u32 1.1754944e-38, %v1487_v3  ;;  %vm1520_vm12 = vcmp.ne.s32.totalorder %v1508_v50, %v4336_v51 }
 0x440   :  { %v1883_v1 = vpack.c.bf16 %v1864_v55, %v1864_v55  ;;  %1964 = vmatpush.bf16.xpose.msra.mxu3 %v1956_v0  ;;  %3530 = vrcp.f32 %v1460_v38  ;;  %vm1496_vm13 = vweird.f32 %v1460_v38  ;;  %vm1523_vm15 = vmand %vm1515_vm11, %vm1520_vm12  ;;  %vm1529_vm1 = vcmp.eq.s32.totalorder %v1508_v50, %v4336_v51 }
 0x441   :  { %v1935_v22 = vunpack.c.l.b16 %v1871_v26  ;;  %v3529_v44 = vpop.eup %3528  ;;  %v1502_v55 = vand.u32 2147483648, %v1460_v38  ;;  %v1500_v63 = vand.u32 2147483647, %v1460_v38  ;;  %v1509_v0 = vadd.s32 16, %v1507_v45 }
 0x442   :  { %v2148_v6 = vunpack.c.l.b16 %v1883_v1  ;;  %v1477_v61 = vmul.f32 %v3529_v44, %v1459_v36  ;;  %vm1482_vm8 = vweird.f32 %v3529_v44  ;;  %v1982_v1 = vld [vmem:[%s4584_s3 + $0x10] sm:$0xff]  ;;  %v3213_v56 = vsel %vm1529_vm1, 1.0, %v3587_v39 }
 0x443   :  { %v1937_v28 = vpack.c.b16 %v1935_v22, %v1935_v22  ;;  %vm1483_vm9 = vmor %vm1481_vm7, %vm1482_vm8  ;;  %v1503_v57 = vor.u32 1.1754944e-38, %v1502_v55  ;;  %v2000_v5 = vsub.f32 1.0, %v1982_v1  ;;  %vm1501_vm0 = vcmp.eq.f32.partialorder %v1500_v63, 8.507059e+37 }
 0x444   :  { %v2150_v11 = vpack.c.b16 %v2148_v6, %v2148_v6  ;;  %v1478_v40 = vsub.f32 1.0, %v1477_v61  ;;  %vm1521_vm4 = vcmp.ne.s32.totalorder %v1509_v0, %v4336_v51  ;;  %vm1543_vm7 = vcmask 195584  }
 0x445   :  { %vm1524_vm5 = vmand %vm1515_vm11, %vm1521_vm4 }
 0x446   :  { %v2159_v4 = vsel %vm2113_vm6, %v2150_v11, 0  ;;  %v3531_v42 = vpop.eup %3530  ;;  %v1479_v43 = vmul.f32 %v3529_v44, %v1478_v40  ;;  %vm1530_vm6 = vcmp.eq.s32.totalorder %v1509_v0, %v4336_v51  ;;  %v2006_v11 = vmul.f32 -10000.0, %v2000_v5  ;;  %v1986_v40 = vld [vmem:[%s4584_s3 + $0x30] sm:$0xff] }
 0x447   :  { %2167 = vmatpush.bf16.msra.mxu1 %v2159_v4  ;;  %3249 = vmatmul.msk.bf16.gmra.mxu0 %vm1329_vm2, %v1891_v12  ;;  %v1492_v48 = vmul.f32 %v3531_v42, %v1460_v38  ;;  %vm1497_vm14 = vweird.f32 %v3531_v42  ;;  %v3214_v58 = vsel %vm1530_vm6, 1.0, %v3587_v39 }
 0x448   :  { %1965 = vmatpush.bf16.xpose.msra.mxu3 %v1953_v18  ;;  %v1480_v9 = vadd.f32 %v3529_v44, %v1479_v43  ;;  %vm1498_vm3 = vmor %vm1496_vm13, %vm1497_vm14 }
 0x449   :  { %v1493_v32 = vsub.f32 1.0, %v1492_v48 }
 0x44a   :  { %v1484_v53 = vsel %vm1483_vm9, %v3529_v44, %v1480_v9  ;;  %v1985_v44 = vld [vmem:[%s4584_s3 + $0x28] sm:$0xff] }
 0x44b   :  { %2168 = vmatpush.bf16.msra.mxu1 %v2149_v20  ;;  %v1494_v59 = vmul.f32 %v3531_v42, %v1493_v32  ;;  %v1489_v60 = vsel %vm1486_vm10, %v1488_v54, %v1484_v53  ;;  %v2003_v39 = vsub.f32 1.0, %v1985_v44 }
 0x44c   :  { %v4346_v2 = vsel %vm1523_vm15, %v1489_v60, 0.0 }
 0x44d   :  { %v1495_v62 = vadd.f32 %v3531_v42, %v1494_v59  ;;  %v1538_v7 = vadd.f32 %v3213_v56, %v4346_v2  ;;  %v2009_v41 = vmul.f32 -10000.0, %v2003_v39 }
 0x44f   :  { %3250 = vmatmul.msk.bf16.vlgmr.msra.gmra.mxu3 %vm1329_vm2, %v1936_v23  ;;  %v1499_v6 = vsel %vm1498_vm3, %v3531_v42, %v1495_v62  ;;  %v1995_v13 = vsel %vm1515_vm11, %v1538_v7, %v1983_v8  ;;  %v1998_v43 = vsel %vm1515_vm11, %v1538_v7, %v1986_v40 }
 0x450   :  { %v1504_v37 = vsel %vm1501_vm0, %v1503_v57, %v1499_v6  ;;  %v2001_v18 = vsub.f32 1.0, %v1995_v13  ;;  %v2004_v9 = vsub.f32 1.0, %v1998_v43 }
 0x451   :  { %v4358_v4 = vsel %vm1524_vm5, %v1504_v37, 0.0 }
 0x452   :  { %v1539_v19 = vadd.f32 %v3214_v58, %v4358_v4  ;;  %v2007_v23 = vmul.f32 -10000.0, %v2001_v18  ;;  %v2010_v49 = vmul.f32 -10000.0, %v2004_v9 }
 0x454   :  { %v1996_v25 = vsel %vm1515_vm11, %v1539_v19, %v1984_v21  ;;  %v1999_v31 = vsel %vm1515_vm11, %v1539_v19, %v1987_v29 }
 0x455   :  { %v2005_v54 = vsub.f32 1.0, %v1999_v31 }
 0x457   :  { %v2011_v60 = vmul.f32 -10000.0, %v2005_v54 }
 0x45f   :  { %3251 = vmatmul.msk.bf16.gmra.mxu3 %vm1329_vm2, %v1937_v28  ;;  %v2002_v28 = vsub.f32 1.0, %v1996_v25 }
 0x461   :  { %v2008_v33 = vmul.f32 -10000.0, %v2002_v28 }
 0x4b4   :  { %v1921_v12 = vpop.f32.mrf.mxu0 }
 0x4b5   :  { %v1976_v16 = vmul.f32 0.17677669, %v1921_v12 }
 0x4b7   :  { %v2012_v17 = vadd.f32 %v2006_v11, %v1976_v16 }
 0x4b9   :  { %v2018_v20 = vsel %vm1543_vm7, %v2012_v17, -inf }
 0x4ba   :  { %2019 = vmax.xlane.f32.xlu2 %v2018_v20 }
 0x4bc   :  { %v1923_v24 = vpop.f32.mrf.mxu0 }
 0x4bd   :  { %v1977_v26 = vmul.f32 0.17677669, %v1923_v24 }
 0x4bf   :  { %v2013_v22 = vadd.f32 %v2007_v23, %v1977_v26 }
 0x4c1   :  { %v2021_v30 = vsel %vm1543_vm7, %v2013_v22, -inf }
 0x4c2   :  { %2022 = vmax.xlane.f32.xlu0 %v2021_v30 }
 0x4c4   :  { %v1926_v34 = vpop.f32.mrf.mxu0 }
 0x4c5   :  { %v1978_v36 = vmul.f32 0.17677669, %v1926_v34 }
 0x4c7   :  { %v2014_v10 = vadd.f32 %v2008_v33, %v1978_v36 }
 0x4c9   :  { %v2024_v38 = vsel %vm1543_vm7, %v2014_v10, -inf }
 0x4ca   :  { %2025 = vmax.xlane.f32.xlu1 %v2024_v38 }
 0x4cc   :  { %v1928_v61 = vpop.f32.mrf.mxu0 }
 0x4d2   :  { %v1967_v42 = vpop.f32.mrf.mxu3 }
 0x4d3   :  { %v1979_v45 = vmul.f32 0.17677669, %v1967_v42 }
 0x4d5   :  { %v2015_v48 = vadd.f32 %v2009_v41, %v1979_v45 }
 0x4d7   :  { %v2027_v3 = vsel %vm1543_vm7, %v2015_v48, -inf }
 0x4d8   :  { %2028 = vmax.xlane.f32.xlu2 %v2027_v3 }
 0x4da   :  { %v1969_v50 = vpop.f32.mrf.mxu3 }
 0x4db   :  { %v1980_v32 = vmul.f32 0.17677669, %v1969_v50 }
 0x4dd   :  { %v2016_v53 = vadd.f32 %v2010_v49, %v1980_v32 }
 0x4df   :  { %v2030_v59 = vsel %vm1543_vm7, %v2016_v53, -inf }
 0x4e0   :  { %2031 = vmax.xlane.f32.xlu0 %v2030_v59 }
 0x4e2   :  { %v1972_v55 = vpop.f32.mrf.mxu3 }
 0x4e3   :  { %v1981_v62 = vmul.f32 0.17677669, %v1972_v55 }
 0x4e5   :  { %v2017_v63 = vadd.f32 %v2011_v60, %v1981_v62 }
 0x4e7   :  { %v2033_v21 = vsel %vm1543_vm7, %v2017_v63, -inf }
 0x4ea   :  { %v1974_v51 = vpop.f32.mrf.mxu3 }
 0x52d   :  { %v2020_v0 = vpop.xlane.xlu2 %2019 }
 0x52e   :  { %v2036_v1 = vsub.f32 %v2012_v17, %v2020_v0 }
 0x530   :  { %v2042_v56 = vmul.f32 1.442695, %v2036_v1 }
 0x532   :  { %3532 = vpow2.f32 %v2042_v56 }
 0x535   :  { %v2023_v57 = vpop.xlane.xlu0 %2022 }
 0x536   :  { %v2037_v5 = vsub.f32 %v2013_v22, %v2023_v57 }
 0x538   :  { %v3533_v6 = vpop.eup %3532  ;;  %v2044_v7 = vmul.f32 1.442695, %v2037_v5  ;;  %v3456_v5 = vld [vmem:[%s4581_s1 + $0x358] sm:$0xff] }
 0x539   :  { %v2054_v8 = vsel %vm1543_vm7, %v3533_v6, 0.0  ;;  %2215 = vmatpush.bf16.msrb.mxu2 %v3456_v5 }
 0x53a   :  { %3534 = vpow2.f32 %v2044_v7  ;;  %2055 = vadd.xlane.f32.xlu1 %v2054_v8 }
 0x53d   :  { %v2026_v37 = vpop.xlane.xlu1 %2025 }
 0x53e   :  { %v2038_v11 = vsub.f32 %v2014_v10, %v2026_v37 }
 0x540   :  { %v3535_v12 = vpop.eup %3534  ;;  %v2046_v13 = vmul.f32 1.442695, %v2038_v11 }
 0x541   :  { %v2057_v16 = vsel %vm1543_vm7, %v3535_v12, 0.0 }
 0x542   :  { %3536 = vpow2.f32 %v2046_v13  ;;  %2058 = vadd.xlane.f32.xlu2 %v2057_v16 }
 0x548   :  { %v3537_v58 = vpop.eup %3536 }
 0x549   :  { %v2060_v17 = vsel %vm1543_vm7, %v3537_v58, 0.0 }
 0x54a   :  { %2061 = vadd.xlane.f32.xlu0 %v2060_v17 }
 0x54b   :  { %v2029_v18 = vpop.xlane.xlu2 %2028 }
 0x54c   :  { %v2039_v19 = vsub.f32 %v2015_v48, %v2029_v18 }
 0x54e   :  { %v2048_v20 = vmul.f32 1.442695, %v2039_v19 }
 0x550   :  { %3538 = vpow2.f32 %v2048_v20 }
 0x552   :  { %2034 = vmax.xlane.f32.xlu0 %v2033_v21 }
 0x553   :  { %v2032_v23 = vpop.xlane.xlu0 %2031 }
 0x554   :  { %v2040_v24 = vsub.f32 %v2016_v53, %v2032_v23 }
 0x556   :  { %v3539_v25 = vpop.eup %3538  ;;  %v2050_v26 = vmul.f32 1.442695, %v2040_v24  ;;  %v3490_v24 = vld [vmem:[%s4583_s2 + $0x9] ss:$0 sm:$0xff] }
 0x557   :  { %v2063_v22 = vsel %vm1543_vm7, %v3539_v25, 0.0 }
 0x558   :  { %3540 = vpow2.f32 %v2050_v26  ;;  %2064 = vadd.xlane.f32.xlu1 %v2063_v22 }
 0x55e   :  { %v3541_v28 = vpop.eup %3540 }
 0x55f   :  { %v2066_v29 = vsel %vm1543_vm7, %v3541_v28, 0.0 }
 0x560   :  { %2067 = vadd.xlane.f32.xlu2 %v2066_v29 }
 0x5ad   :  { %v2056_v30 = vpop.xlane.xlu1 %2055 }
 0x5ae   :  { %3542 = vrcp.f32 %v2056_v30 }
 0x5b4   :  { %v3543_v33 = vpop.eup %3542 }
 0x5b5   :  { %v2059_v31 = vpop.xlane.xlu2 %2058  ;;  %v2078_v34 = vmul.f32 %v3543_v33, %v3533_v6  ;;  %v3455_v6 = vld [vmem:[%s4581_s1 + $0x350] sm:$0xff] }
 0x5b6   :  { %3544 = vrcp.f32 %v2059_v31  ;;  %2216 = vmatpush.bf16.msrb.mxu2 %v3455_v6 }
 0x5b7   :  { %v2084_v10 = vpack.c.bf16 %v2078_v34, %v2078_v34 }
 0x5b9   :  { %v2093_v39 = vunpack.c.l.b16 %v2084_v10 }
 0x5bc   :  { %v3545_v36 = vpop.eup %3544 }
 0x5bd   :  { %v2079_v38 = vmul.f32 %v3545_v36, %v3535_v12  ;;  %v2062_v44 = vpop.xlane.xlu0 %2061 }
 0x5be   :  { %3546 = vrcp.f32 %v2062_v44 }
 0x5bf   :  { %v2085_v61 = vpack.c.bf16 %v2079_v38, %v2079_v38 }
 0x5c1   :  { %v2094_v40 = vunpack.c.l.b16 %v2085_v61 }
 0x5c3   :  { %v2096_v41 = vpack.c.b16 %v2094_v40, %v2093_v39 }
 0x5c4   :  { %v3547_v42 = vpop.eup %3546 }
 0x5c5   :  { %3252 = vmatmul.msk.bf16.vlgmr.msrb.gmra.mxu0 %vm1543_vm7, %v2096_v41  ;;  %v2035_v43 = vpop.xlane.xlu0 %2034  ;;  %v2080_v48 = vmul.f32 %v3547_v42, %v3537_v58 }
 0x5c6   :  { %v2041_v45 = vsub.f32 %v2017_v63, %v2035_v43 }
 0x5c7   :  { %v2086_v49 = vpack.c.bf16 %v2080_v48, %v2080_v48 }
 0x5c8   :  { %v2052_v9 = vmul.f32 1.442695, %v2041_v45 }
 0x5c9   :  { %v2095_v50 = vunpack.c.l.b16 %v2086_v49 }
 0x5ca   :  { %3548 = vpow2.f32 %v2052_v9 }
 0x5cb   :  { %v2065_v3 = vpop.xlane.xlu1 %2064  ;;  %v2097_v59 = vpack.c.b16 %v2095_v50, %v2095_v50 }
 0x5cc   :  { %3550 = vrcp.f32 %v2065_v3 }
 0x5d0   :  { %v3549_v32 = vpop.eup %3548 }
 0x5d1   :  { %v2069_v53 = vsel %vm1543_vm7, %v3549_v32, 0.0 }
 0x5d2   :  { %2070 = vadd.xlane.f32.xlu1 %v2069_v53  ;;  %v3551_v60 = vpop.eup %3550 }
 0x5d3   :  { %v2068_v54 = vpop.xlane.xlu2 %2067  ;;  %v2081_v55 = vmul.f32 %v3551_v60, %v3539_v25 }
 0x5d4   :  { %3552 = vrcp.f32 %v2068_v54 }
 0x5d5   :  { %3253 = vmatmul.msk.bf16.gmra.mxu0 %vm1543_vm7, %v2097_v59  ;;  %v2087_v63 = vpack.c.bf16 %v2081_v55, %v2081_v55 }
 0x5d7   :  { %v2138_v1 = vunpack.c.l.b16 %v2087_v63 }
 0x5da   :  { %v3553_v62 = vpop.eup %3552 }
 0x5db   :  { %v2082_v51 = vmul.f32 %v3553_v62, %v3541_v28 }
 0x5dd   :  { %v2088_v0 = vpack.c.bf16 %v2082_v51, %v2082_v51 }
 0x5df   :  { %v2139_v56 = vunpack.c.l.b16 %v2088_v0 }
 0x5e1   :  { %v2141_v57 = vpack.c.b16 %v2139_v56, %v2138_v1 }
 0x5e3   :  { %3254 = vmatmul.msk.bf16.vlgmr.msra.gmra.mxu1 %vm1543_vm7, %v2141_v57 }
 0x642   :  { %v2126_v7 = vpop.f32.mrf.mxu0 }
 0x645   :  { %v2071_v8 = vpop.xlane.xlu1 %2070 }
 0x646   :  { %3554 = vrcp.f32 %v2071_v8 }
 0x64a   :  { %v2128_v37 = vpop.f32.mrf.mxu0 }
 0x64b   :  { %v2179_v11 = vpack.c.bf16 %v2128_v37, %v2126_v7  ;;  %v3458_v37 = vld [vmem:[%s4581_s1 + $0x368] sm:$0xff] }
 0x64c   :  { %v3555_v12 = vpop.eup %3554  ;;  %2423 = vmatpush.bf16.msrb.mxu3 %v3458_v37 }
 0x64d   :  { %v2083_v13 = vmul.f32 %v3555_v12, %v3549_v32  ;;  %3264 = vmatmul.msk.bf16.vlgmr.msrb.gmra.mxu2 %vm1329_vm2, %v2179_v11 }
 0x64f   :  { %v2089_v16 = vpack.c.bf16 %v2083_v13, %v2083_v13 }
 0x651   :  { %v2140_v58 = vunpack.c.l.b16 %v2089_v16 }
 0x652   :  { %v2131_v17 = vpop.f32.mrf.mxu0 }
 0x653   :  { %v2142_v18 = vpack.c.b16 %v2140_v58, %v2140_v58 }
 0x655   :  { %3255 = vmatmul.msk.bf16.gmra.mxu1 %vm1543_vm7, %v2142_v18 }
 0x65a   :  { %v2133_v19 = vpop.f32.mrf.mxu0 }
 0x660   :  { %v2170_v20 = vpop.f32.mrf.mxu1 }
 0x661   :  { %v2180_v21 = vpack.c.bf16 %v2170_v20, %v2131_v17 }
 0x663   :  { %3265 = vmatmul.msk.bf16.gmra.mxu2 %vm1329_vm2, %v2180_v21 }
 0x668   :  { %v2172_v23 = vpop.f32.mrf.mxu1 }
 0x6d0   :  { %v2218_v25 = vpop.f32.mrf.mxu2 }
 0x6d1   :  { %v2219_v26 = vadd.f32 %v3490_v24, %v2218_v25 }
 0x6d2   :  { %v2175_v22 = vpop.f32.mrf.mxu1 }
 0x6d3   :  { %v2181_v28 = vpack.c.bf16 %v2175_v22, %v2172_v23  ;;  %v2233_v29 = vadd.f32 %v2219_v26, %v4257_v14 }
 0x6d5   :  { %3266 = vmatmul.msk.bf16.gmra.mxu2 %vm1329_vm2, %v2181_v28  ;;  %v2241_v30 = vsel %vm1329_vm2, %v2233_v29, 0.0 }
 0x6d6   :  { %2242 = vadd.xlane.f32.xlu2 %v2241_v30 }
 0x6d8   :  { %v2220_v31 = vpop.f32.mrf.mxu2 }
 0x6d9   :  { %v2221_v33 = vadd.f32 %v3490_v24, %v2220_v31 }
 0x6da   :  { %v2177_v34 = vpop.f32.mrf.mxu1 }
 0x6db   :  { %v2234_v36 = vadd.f32 %v2221_v33, %v4259_v15 }
 0x6dd   :  { %v2244_v10 = vsel %vm1329_vm2, %v2234_v36, 0.0 }
 0x6de   :  { %2245 = vadd.xlane.f32.xlu0 %v2244_v10 }
 0x6e6   :  { %v2223_v38 = vpop.f32.mrf.mxu2 }
 0x6e7   :  { %v2224_v44 = vadd.f32 %v3490_v24, %v2223_v38 }
 0x6e9   :  { %v2235_v61 = vadd.f32 %v2224_v44, %v4272_v35 }
 0x6eb   :  { %v2247_v39 = vsel %vm1329_vm2, %v2235_v61, 0.0 }
 0x6ec   :  { %2248 = vadd.xlane.f32.xlu1 %v2247_v39  ;;  %v4461_v39 = vld [vmem:[%s4583_s2 + $0xa] ss:$0 sm:$0xff] }
 0x6ee   :  { %v2225_v14 = vpop.f32.mrf.mxu2 }
 0x6ef   :  { %v2226_v40 = vadd.f32 %v3490_v24, %v2225_v14 }
 0x6f1   :  { %v2236_v41 = vadd.f32 %v2226_v40, %v4274_v27 }
 0x6f3   :  { %v2250_v42 = vsel %vm1329_vm2, %v2236_v41, 0.0 }
 0x6f4   :  { %2251 = vadd.xlane.f32.xlu2 %v2250_v42 }
 0x749   :  { %v2243_v43 = vpop.xlane.xlu2 %2242 }
 0x74a   :  { %v2259_v15 = vmul.f32 %v2243_v43, %v4126_v52 }
 0x74c   :  { %v4416_v45 = vsub.f32 %v2233_v29, %v2259_v15  ;;  %v4467_v15 = vld [vmem:[%s4583_s2 + $0xb] ss:$0 sm:$0xff] }
 0x74e   :  { %v2271_v48 = vmul.f32 %v4416_v45, %v4416_v45 }
 0x750   :  { %v2277_v35 = vsel %vm1329_vm2, %v2271_v48, 0.0 }
 0x751   :  { %2278 = vadd.xlane.f32.xlu0 %v2277_v35  ;;  %v2246_v9 = vpop.xlane.xlu0 %2245 }
 0x752   :  { %v2260_v3 = vmul.f32 %v2246_v9, %v4126_v52 }
 0x754   :  { %v4422_v49 = vsub.f32 %v2234_v36, %v2260_v3 }
 0x756   :  { %v2272_v27 = vmul.f32 %v4422_v49, %v4422_v49 }
 0x758   :  { %v2228_v50 = vpop.f32.mrf.mxu2  ;;  %v2280_v32 = vsel %vm1329_vm2, %v2272_v27, 0.0 }
 0x759   :  { %v2229_v53 = vadd.f32 %v3490_v24, %v2228_v50  ;;  %2281 = vadd.xlane.f32.xlu1 %v2280_v32 }
 0x75b   :  { %v2237_v54 = vadd.f32 %v2229_v53, %v4287_v47 }
 0x75d   :  { %v2253_v55 = vsel %vm1329_vm2, %v2237_v54, 0.0 }
 0x75f   :  { %v2249_v59 = vpop.xlane.xlu1 %2248 }
 0x760   :  { %v2261_v60 = vmul.f32 %v2249_v59, %v4126_v52  ;;  %v2230_v63 = vpop.f32.mrf.mxu2 }
 0x761   :  { %2254 = vadd.xlane.f32.xlu1 %v2253_v55  ;;  %v2231_v0 = vadd.f32 %v3490_v24, %v2230_v63 }
 0x762   :  { %v4430_v62 = vsub.f32 %v2235_v61, %v2261_v60 }
 0x763   :  { %v2238_v5 = vadd.f32 %v2231_v0, %v4285_v46  ;;  %v3457_v46 = vld [vmem:[%s4581_s1 + $0x360] sm:$0xff] }
 0x764   :  { %v2273_v51 = vmul.f32 %v4430_v62, %v4430_v62  ;;  %2424 = vmatpush.bf16.msrb.mxu3 %v3457_v46 }
 0x765   :  { %v2256_v8 = vsel %vm1329_vm2, %v2238_v5, 0.0 }
 0x766   :  { %v2283_v1 = vsel %vm1329_vm2, %v2273_v51, 0.0 }
 0x767   :  { %v2252_v56 = vpop.xlane.xlu2 %2251  ;;  %2284 = vadd.xlane.f32.xlu2 %v2283_v1 }
 0x768   :  { %v2262_v57 = vmul.f32 %v2252_v56, %v4126_v52 }
 0x76a   :  { %v4436_v47 = vsub.f32 %v2236_v41, %v2262_v57 }
 0x76c   :  { %v2274_v6 = vmul.f32 %v4436_v47, %v4436_v47 }
 0x76e   :  { %v2286_v7 = vsel %vm1329_vm2, %v2274_v6, 0.0 }
 0x76f   :  { %2287 = vadd.xlane.f32.xlu0 %v2286_v7  ;;  %2257 = vadd.xlane.f32.xlu2 %v2256_v8 }
 0x7c4   :  { %v2279_v11 = vpop.xlane.xlu0 %2278 }
 0x7c5   :  { %v2295_v12 = vmul.f32 %v2279_v11, %v4126_v52 }
 0x7c7   :  { %v2301_v13 = vadd.f32 1e-12, %v2295_v12 }
 0x7c9   :  { %3556 = vrsqrt.f32 %v2301_v13  ;;  %vm2313_vm9 = vweird.f32 %v2301_v13 }
 0x7cc   :  { %v2282_v16 = vpop.xlane.xlu1 %2281 }
 0x7cd   :  { %v2296_v58 = vmul.f32 %v2282_v16, %v4126_v52 }
 0x7cf   :  { %v3557_v17 = vpop.eup %3556  ;;  %v2302_v18 = vadd.f32 1e-12, %v2296_v58 }
 0x7d0   :  { %v2308_v19 = vmul.f32 %v3557_v17, %v2301_v13  ;;  %vm2314_vm8 = vweird.f32 %v3557_v17 }
 0x7d1   :  { %3558 = vrsqrt.f32 %v2302_v18  ;;  %vm2315_vm10 = vmor %vm2313_vm9, %vm2314_vm8  ;;  %vm2323_vm12 = vweird.f32 %v2302_v18 }
 0x7d2   :  { %v2309_v20 = vmul.f32 %v3557_v17, %v2308_v19 }
 0x7d4   :  { %v2310_v21 = vmul.f32 0.5, %v2309_v20  ;;  %v2255_v23 = vpop.xlane.xlu1 %2254 }
 0x7d5   :  { %v2263_v24 = vmul.f32 %v2255_v23, %v4126_v52 }
 0x7d6   :  { %v2311_v25 = vsub.f32 1.5, %v2310_v21  ;;  %v3465_v21 = vld [vmem:[%s4581_s1 + $0x3a0] sm:$0xff] }
 0x7d7   :  { %v3559_v26 = vpop.eup %3558  ;;  %v4452_v22 = vsub.f32 %v2237_v54, %v2263_v24  ;;  %v3464_v24 = vld [vmem:[%s4581_s1 + $0x398] sm:$0xff] }
 0x7d8   :  { %v2312_v28 = vmul.f32 %v3557_v17, %v2311_v25  ;;  %v2318_v29 = vmul.f32 %v3559_v26, %v2302_v18  ;;  %vm2324_vm11 = vweird.f32 %v3559_v26 }
 0x7d9   :  { %v2275_v30 = vmul.f32 %v4452_v22, %v4452_v22  ;;  %vm2325_vm13 = vmor %vm2323_vm12, %vm2324_vm11 }
 0x7da   :  { %v2319_v31 = vmul.f32 %v3559_v26, %v2318_v29  ;;  %v2285_v33 = vpop.xlane.xlu2 %2284  ;;  %v2316_v10 = vsel %vm2315_vm10, %v3557_v17, %v2312_v28 }
 0x7db   :  { %v2297_v34 = vmul.f32 %v2285_v33, %v4126_v52  ;;  %v2289_v36 = vsel %vm1329_vm2, %v2275_v30, 0.0  ;;  %v2367_v14 = vmul.f32 %v2316_v10, %v4416_v45  ;;  %v3463_v30 = vld [vmem:[%s4581_s1 + $0x390] sm:$0xff]  ;;  %v3461_v10 = vld [vmem:[%s4581_s1 + $0x380] sm:$0xff] }
 0x7dc   :  { %v2320_v38 = vmul.f32 0.5, %v2319_v31  ;;  %2290 = vadd.xlane.f32.xlu0 %v2289_v36 }
 0x7dd   :  { %v2303_v44 = vadd.f32 1e-12, %v2297_v34  ;;  %v2374_v48 = vmul.f32 %v4461_v39, %v2367_v14  ;;  %v3462_v34 = vld [vmem:[%s4581_s1 + $0x388] sm:$0xff]  ;;  %v3460_v14 = vld [vmem:[%s4581_s1 + $0x378] sm:$0xff] }
 0x7de   :  { %v2321_v61 = vsub.f32 1.5, %v2320_v38 }
 0x7df   :  { %3560 = vrsqrt.f32 %v2303_v44  ;;  %v4477_v54 = vadd.f32 %v4467_v15, %v2374_v48  ;;  %vm2333_vm15 = vweird.f32 %v2303_v44 }
 0x7e0   :  { %v2322_v40 = vmul.f32 %v3559_v26, %v2321_v61 }
 0x7e2   :  { %v2326_v41 = vsel %vm2325_vm13, %v3559_v26, %v2322_v40  ;;  %v2258_v42 = vpop.xlane.xlu2 %2257  ;;  %v2288_v43 = vpop.xlane.xlu0 %2287 }
 0x7e3   :  { %v2368_v35 = vmul.f32 %v2326_v41, %v4422_v49  ;;  %v2264_v9 = vmul.f32 %v2258_v42, %v4126_v52  ;;  %v2298_v45 = vmul.f32 %v2288_v43, %v4126_v52  ;;  %v4521_v41 = vld [vmem:[%s4583_s2 + $0xc] ss:$0 sm:$0xff] }
 0x7e5   :  { %v3561_v3 = vpop.eup %3560  ;;  %v2375_v27 = vmul.f32 %v4461_v39, %v2368_v35  ;;  %v4474_v50 = vsub.f32 %v2238_v5, %v2264_v9  ;;  %v2304_v32 = vadd.f32 1e-12, %v2298_v45  ;;  %v3459_v35 = vld [vmem:[%s4581_s1 + $0x370] sm:$0xff] }
 0x7e6   :  { %v2328_v53 = vmul.f32 %v3561_v3, %v2303_v44  ;;  %vm2334_vm14 = vweird.f32 %v3561_v3 }
 0x7e7   :  { %v2382_v59 = vadd.f32 %v4467_v15, %v2375_v27  ;;  %3562 = vrsqrt.f32 %v2304_v32  ;;  %v2276_v49 = vmul.f32 %v4474_v50, %v4474_v50  ;;  %vm2335_vm1 = vmor %vm2333_vm15, %vm2334_vm14  ;;  %vm2343_vm0 = vweird.f32 %v2304_v32 }
 0x7e8   :  { %v2329_v60 = vmul.f32 %v3561_v3, %v2328_v53 }
 0x7e9   :  { %v2292_v55 = vsel %vm1329_vm2, %v2276_v49, 0.0  ;;  %v2387_v63 = vpack.c.bf16 %v2382_v59, %v4477_v54 }
 0x7ea   :  { %v2330_v51 = vmul.f32 0.5, %v2329_v60  ;;  %2293 = vadd.xlane.f32.xlu1 %v2292_v55 }
 0x7eb   :  { %3275 = vmatmul.msk.bf16.vlgmr.msrb.gmra.mxu3 %vm1329_vm2, %v2387_v63 }
 0x7ec   :  { %v2331_v0 = vsub.f32 1.5, %v2330_v51 }
 0x7ed   :  { %v3563_v1 = vpop.eup %3562 }
 0x7ee   :  { %v2332_v56 = vmul.f32 %v3561_v3, %v2331_v0  ;;  %v2338_v57 = vmul.f32 %v3563_v1, %v2304_v32  ;;  %vm2344_vm3 = vweird.f32 %v3563_v1 }
 0x7ef   :  { %vm2345_vm4 = vmor %vm2343_vm0, %vm2344_vm3 }
 0x7f0   :  { %v2339_v5 = vmul.f32 %v3563_v1, %v2338_v57  ;;  %v2336_v6 = vsel %vm2335_vm1, %v3561_v3, %v2332_v56 }
 0x7f1   :  { %v2369_v37 = vmul.f32 %v2336_v6, %v4430_v62 }
 0x7f2   :  { %v2340_v7 = vmul.f32 0.5, %v2339_v5 }
 0x7f3   :  { %v2376_v46 = vmul.f32 %v4461_v39, %v2369_v37 }
 0x7f4   :  { %v2341_v8 = vsub.f32 1.5, %v2340_v7 }
 0x7f5   :  { %v2383_v58 = vadd.f32 %v4467_v15, %v2376_v46 }
 0x7f6   :  { %v2342_v11 = vmul.f32 %v3563_v1, %v2341_v8 }
 0x7f8   :  { %v2346_v12 = vsel %vm2345_vm4, %v3563_v1, %v2342_v11 }
 0x7f9   :  { %v2370_v13 = vmul.f32 %v2346_v12, %v4436_v47  ;;  %v3466_v47 = vld [vmem:[%s4581_s1 + $0x3a8] sm:$0xff] }
 0x7fa   :  { %2564 = vmatpush.bf16.msra.mxu0 %v3466_v47 }
 0x7fb   :  { %v2377_v16 = vmul.f32 %v4461_v39, %v2370_v13 }
 0x7fd   :  { %v4491_v17 = vadd.f32 %v4467_v15, %v2377_v16 }
 0x7fe   :  { %2565 = vmatpush.bf16.msra.mxu0 %v3465_v21 }
 0x7ff   :  { %v2388_v18 = vpack.c.bf16 %v4491_v17, %v2383_v58 }
 0x801   :  { %3276 = vmatmul.msk.bf16.gmra.mxu3 %vm1329_vm2, %v2388_v18 }
 0x802   :  { %2566 = vmatpush.bf16.msra.mxu0 %v3464_v24 }
 0x806   :  { %2567 = vmatpush.bf16.msra.mxu0 %v3463_v30 }
 0x80a   :  { %2568 = vmatpush.bf16.msra.mxu0 %v3462_v34 }
 0x80e   :  { %2569 = vmatpush.bf16.msra.mxu0 %v3461_v10 }
 0x812   :  { %2570 = vmatpush.bf16.msra.mxu0 %v3460_v14 }
 0x816   :  { %2571 = vmatpush.bf16.msra.mxu0 %v3459_v35 }
 0x84f   :  { %v2291_v62 = vpop.xlane.xlu0 %2290 }
 0x850   :  { %v2299_v19 = vmul.f32 %v2291_v62, %v4126_v52 }
 0x852   :  { %v2305_v20 = vadd.f32 1e-12, %v2299_v19 }
 0x854   :  { %3564 = vrsqrt.f32 %v2305_v20  ;;  %vm2353_vm6 = vweird.f32 %v2305_v20 }
 0x85a   :  { %v3565_v23 = vpop.eup %3564 }
 0x85b   :  { %v2348_v25 = vmul.f32 %v3565_v23, %v2305_v20  ;;  %vm2354_vm5 = vweird.f32 %v3565_v23 }
 0x85c   :  { %vm2355_vm8 = vmor %vm2353_vm6, %vm2354_vm5 }
 0x85d   :  { %v2349_v26 = vmul.f32 %v3565_v23, %v2348_v25  ;;  %v2294_v28 = vpop.xlane.xlu1 %2293 }
 0x85e   :  { %v2300_v29 = vmul.f32 %v2294_v28, %v4126_v52 }
 0x85f   :  { %v2350_v33 = vmul.f32 0.5, %v2349_v26 }
 0x860   :  { %v2306_v31 = vadd.f32 1e-12, %v2300_v29 }
 0x861   :  { %v2351_v36 = vsub.f32 1.5, %v2350_v33 }
 0x862   :  { %3566 = vrsqrt.f32 %v2306_v31  ;;  %vm2363_vm10 = vweird.f32 %v2306_v31 }
 0x863   :  { %v2352_v44 = vmul.f32 %v3565_v23, %v2351_v36 }
 0x865   :  { %v2356_v42 = vsel %vm2355_vm8, %v3565_v23, %v2352_v44 }
 0x866   :  { %v2371_v3 = vmul.f32 %v2356_v42, %v4452_v22 }
 0x868   :  { %v3567_v38 = vpop.eup %3566  ;;  %v2378_v60 = vmul.f32 %v4461_v39, %v2371_v3 }
 0x869   :  { %v2358_v61 = vmul.f32 %v3567_v38, %v2306_v31  ;;  %vm2364_vm9 = vweird.f32 %v3567_v38 }
 0x86a   :  { %vm2365_vm11 = vmor %vm2363_vm10, %vm2364_vm9  ;;  %v2385_v22 = vadd.f32 %v4467_v15, %v2378_v60  ;;  %v3494_v60 = vld [vmem:[%s4583_s2 + $0xd] ss:$0 sm:$0xff] }
 0x86b   :  { %v2359_v40 = vmul.f32 %v3567_v38, %v2358_v61 }
 0x86d   :  { %v2360_v43 = vmul.f32 0.5, %v2359_v40 }
 0x86e   :  { %v2426_v48 = vpop.f32.mrf.mxu3 }
 0x86f   :  { %v2361_v9 = vsub.f32 1.5, %v2360_v43  ;;  %v2427_v45 = vadd.f32 %v4521_v41, %v2426_v48 }
 0x871   :  { %v2362_v27 = vmul.f32 %v3567_v38, %v2361_v9  ;;  %v2441_v32 = vmul.f32 %v2427_v45, %v2427_v45 }
 0x873   :  { %v2366_v53 = vsel %vm2365_vm11, %v3567_v38, %v2362_v27  ;;  %v2447_v59 = vmul.f32 %v2441_v32, %v2427_v45 }
 0x874   :  { %v2372_v49 = vmul.f32 %v2366_v53, %v4474_v50 }
 0x875   :  { %v2453_v55 = vmul.f32 0.044715, %v2447_v59 }
 0x876   :  { %v2428_v63 = vpop.f32.mrf.mxu3  ;;  %v2379_v51 = vmul.f32 %v4461_v39, %v2372_v49 }
 0x877   :  { %v2459_v0 = vadd.f32 %v2453_v55, %v2427_v45  ;;  %v2429_v1 = vadd.f32 %v4521_v41, %v2428_v63 }
 0x878   :  { %v2386_v56 = vadd.f32 %v4467_v15, %v2379_v51 }
 0x879   :  { %v2465_v57 = vmul.f32 0.7978846, %v2459_v0  ;;  %v2442_v5 = vmul.f32 %v2429_v1, %v2429_v1 }
 0x87a   :  { %v2389_v6 = vpack.c.bf16 %v2386_v56, %v2385_v22 }
 0x87b   :  { %v2448_v7 = vmul.f32 %v2442_v5, %v2429_v1  ;;  %3568 = vtanh.f32 %v2465_v57 }
 0x87c   :  { %3277 = vmatmul.msk.bf16.gmra.mxu3 %vm1329_vm2, %v2389_v6 }
 0x87d   :  { %v2454_v50 = vmul.f32 0.044715, %v2448_v7 }
 0x87f   :  { %v2460_v8 = vadd.f32 %v2454_v50, %v2429_v1 }
 0x881   :  { %v2466_v37 = vmul.f32 0.7978846, %v2460_v8  ;;  %v3569_v11 = vpop.eup %3568 }
 0x882   :  { %v2477_v13 = vadd.f32 1.0, %v3569_v11 }
 0x883   :  { %3570 = vtanh.f32 %v2466_v37 }
 0x884   :  { %v2431_v39 = vpop.f32.mrf.mxu3  ;;  %v2483_v15 = vmul.f32 0.5, %v2477_v13 }
 0x885   :  { %v2432_v12 = vadd.f32 %v4521_v41, %v2431_v39 }
 0x886   :  { %v2489_v23 = vmul.f32 %v2483_v15, %v2427_v45 }
 0x887   :  { %v2443_v46 = vmul.f32 %v2432_v12, %v2432_v12 }
 0x889   :  { %v3571_v16 = vpop.eup %3570  ;;  %v2449_v58 = vmul.f32 %v2443_v46, %v2432_v12 }
 0x88a   :  { %v2478_v18 = vadd.f32 1.0, %v3571_v16 }
 0x88b   :  { %v2455_v62 = vmul.f32 0.044715, %v2449_v58 }
 0x88c   :  { %v2484_v19 = vmul.f32 0.5, %v2478_v18  ;;  %v2433_v20 = vpop.f32.mrf.mxu3 }
 0x88d   :  { %v2461_v47 = vadd.f32 %v2455_v62, %v2432_v12  ;;  %v2434_v21 = vadd.f32 %v4521_v41, %v2433_v20 }
 0x88e   :  { %v2490_v24 = vmul.f32 %v2484_v19, %v2429_v1 }
 0x88f   :  { %v2467_v25 = vmul.f32 0.7978846, %v2461_v47  ;;  %v2444_v26 = vmul.f32 %v2434_v21, %v2434_v21 }
 0x890   :  { %v2495_v28 = vpack.c.bf16 %v2490_v24, %v2489_v23 }
 0x891   :  { %v2450_v29 = vmul.f32 %v2444_v26, %v2434_v21  ;;  %3572 = vtanh.f32 %v2467_v25  ;;  %v1541_v26 = vand.u32 2147483647, %v4346_v2  ;;  %v3467_v2 = vld [vmem:[%s4581_s1 + $0x3b0] sm:$0xff] }
 0x892   :  { %2572 = vmatmul.bf16.vlgmr.msra.gmra.mxu0 %v2495_v28  ;;  %v1542_v28 = vand.u32 2147483647, %v4358_v4 }
 0x893   :  { %v2456_v30 = vmul.f32 0.044715, %v2450_v29  ;;  %v1545_v29 = vsel %vm1543_vm7, %v1541_v26, 0.0 }
 0x895   :  { %v2462_v31 = vadd.f32 %v2456_v30, %v2434_v21  ;;  %v1547_v30 = vsel %vm1543_vm7, %v1542_v28, 0.0 }
 0x897   :  { %v2468_v33 = vmul.f32 0.7978846, %v2462_v31  ;;  %v3573_v34 = vpop.eup %3572  ;;  %v1548_v31 = vadd.f32 %v1547_v30, %v1545_v29 }
 0x898   :  { %v2479_v36 = vadd.f32 1.0, %v3573_v34 }
 0x899   :  { %3574 = vtanh.f32 %v2468_v33 }
 0x89a   :  { %v2485_v44 = vmul.f32 0.5, %v2479_v36 }
 0x89c   :  { %v2491_v14 = vmul.f32 %v2485_v44, %v2432_v12 }
 0x89f   :  { %v3575_v10 = vpop.eup %3574 }
 0x8a0   :  { %v2480_v38 = vadd.f32 1.0, %v3575_v10  ;;  %v3468_v10 = vld [vmem:[%s4581_s1 + $0x3b8] sm:$0xff] }
 0x8a1   :  { %2666 = vmatpush.bf16.msrb.mxu1 %v3468_v10 }
 0x8a2   :  { %v2486_v61 = vmul.f32 0.5, %v2480_v38 }
 0x8a4   :  { %v2492_v40 = vmul.f32 %v2486_v61, %v2434_v21 }
 0x8a5   :  { %2667 = vmatpush.bf16.msrb.mxu1 %v3467_v2 }
 0x8a6   :  { %v2496_v42 = vpack.c.bf16 %v2492_v40, %v2491_v14 }
 0x8a8   :  { %2576 = vmatmul.bf16.gmra.mxu0 %v2496_v42 }
 0x8ff   :  { %v2436_v43 = vpop.f32.mrf.mxu3 }
 0x900   :  { %v2437_v48 = vadd.f32 %v4521_v41, %v2436_v43 }
 0x902   :  { %v2445_v35 = vmul.f32 %v2437_v48, %v2437_v48 }
 0x904   :  { %v2451_v9 = vmul.f32 %v2445_v35, %v2437_v48 }
 0x906   :  { %v2457_v45 = vmul.f32 0.044715, %v2451_v9 }
 0x907   :  { %v2438_v3 = vpop.f32.mrf.mxu3 }
 0x908   :  { %v2463_v27 = vadd.f32 %v2457_v45, %v2437_v48  ;;  %v2439_v32 = vadd.f32 %v4521_v41, %v2438_v3 }
 0x90a   :  { %v2469_v53 = vmul.f32 0.7978846, %v2463_v27  ;;  %v2446_v59 = vmul.f32 %v2439_v32, %v2439_v32 }
 0x90c   :  { %v2452_v49 = vmul.f32 %v2446_v59, %v2439_v32  ;;  %3576 = vtanh.f32 %v2469_v53  ;;  %v3495_v53 = vld [vmem:[%s4583_s2 + $0xe] ss:$0 sm:$0xff] }
 0x90e   :  { %v2458_v55 = vmul.f32 0.044715, %v2452_v49 }
 0x90f   :  { %v2573_v63 = vpop.f32.mrf.mxu0 }
 0x910   :  { %v2464_v51 = vadd.f32 %v2458_v55, %v2439_v32  ;;  %v2574_v0 = vadd.f32 %v3494_v60, %v2573_v63 }
 0x912   :  { %v2470_v1 = vmul.f32 0.7978846, %v2464_v51  ;;  %v2584_v22 = vadd.f32 %v2574_v0, %v4477_v54  ;;  %v3577_v56 = vpop.eup %3576 }
 0x913   :  { %v2481_v5 = vadd.f32 1.0, %v3577_v56 }
 0x914   :  { %3578 = vtanh.f32 %v2470_v1  ;;  %v2588_v57 = vsel %vm1329_vm2, %v2584_v22, 0.0 }
 0x915   :  { %2589 = vadd.xlane.f32.xlu2 %v2588_v57  ;;  %v2487_v50 = vmul.f32 0.5, %v2481_v5 }
 0x917   :  { %v2575_v41 = vpop.f32.mrf.mxu0  ;;  %v2493_v37 = vmul.f32 %v2487_v50, %v2437_v48 }
 0x91a   :  { %v3579_v6 = vpop.eup %3578 }
 0x91b   :  { %v2482_v7 = vadd.f32 1.0, %v3579_v6 }
 0x91d   :  { %v2488_v8 = vmul.f32 0.5, %v2482_v7 }
 0x91f   :  { %v2494_v11 = vmul.f32 %v2488_v8, %v2439_v32 }
 0x921   :  { %v2497_v39 = vpack.c.bf16 %v2494_v11, %v2493_v37  ;;  %v3497_v37 = vld [vmem:[%s4583_s2 + $0x10] ss:$0 sm:$0xff] }
 0x923   :  { %2580 = vmatmul.bf16.gmra.mxu0 %v2497_v39 }
 0x925   :  { %v2577_v12 = vpop.f32.mrf.mxu0 }
 0x92d   :  { %v2578_v13 = vpop.f32.mrf.mxu0 }
 0x92e   :  { %v2579_v46 = vadd.f32 %v3494_v60, %v2578_v13  ;;  %v3496_v60 = vld [vmem:[%s4583_s2 + $0xf] ss:$0 sm:$0xff] }
 0x930   :  { %v2585_v54 = vadd.f32 %v2579_v46, %v4491_v17 }
 0x932   :  { %v2591_v16 = vsel %vm1329_vm2, %v2585_v54, 0.0 }
 0x933   :  { %2592 = vadd.xlane.f32.xlu0 %v2591_v16 }
 0x93b   :  { %1549 = vadd.xlane.f32.xlu0 %v1548_v31 }
 0x988   :  { %v2590_v58 = vpop.xlane.xlu2 %2589 }
 0x989   :  { %v2594_v15 = vmul.f32 %v2590_v58, %v4126_v52 }
 0x98b   :  { %v2596_v18 = vsub.f32 %v2584_v22, %v2594_v15 }
 0x98d   :  { %v2598_v62 = vmul.f32 %v2596_v18, %v2596_v18 }
 0x98f   :  { %v2600_v19 = vsel %vm1329_vm2, %v2598_v62, 0.0 }
 0x990   :  { %2601 = vadd.xlane.f32.xlu1 %v2600_v19 }
 0x9a0   :  { %v2581_v20 = vpop.f32.mrf.mxu0 }
 0x9a6   :  { %v2593_v47 = vpop.xlane.xlu0 %2592 }
 0x9a7   :  { %v2595_v21 = vmul.f32 %v2593_v47, %v4126_v52 }
 0x9a8   :  { %v2582_v23 = vpop.f32.mrf.mxu0 }
 0x9a9   :  { %v2597_v24 = vsub.f32 %v2585_v54, %v2595_v21 }
 0x9ab   :  { %v2599_v25 = vmul.f32 %v2597_v24, %v2597_v24 }
 0x9ad   :  { %v2603_v17 = vsel %vm1329_vm2, %v2599_v25, 0.0 }
 0x9ae   :  { %2604 = vadd.xlane.f32.xlu2 %v2603_v17  ;;  %v1550_v56 = vpop.xlane.xlu0 %1549 }
 0x9af   :  { %v1551_v57 = vrot.slane %v1550_v56, 4 }
 0x9b1   :  { %v1552_v41 = vadd.f32 %v1551_v57, %v1550_v56 }
 0x9b3   :  { %v1553_v5 = vrot.slane %v1552_v41, 2 }
 0x9b5   :  { %v1554_v6 = vadd.f32 %v1553_v5, %v1552_v41 }
 0x9b7   :  { %v1555_v7 = vrot.slane %v1554_v6, 1 }
 0x9b9   :  { %v1556_v50 = vadd.f32 %v1555_v7, %v1554_v6 }
 0x9bb   :  { %3473 = vpush %v1556_v50 }
 0x9ec   :  { %s3474_s11 = spop %3473 }
 0x9ed   :  { %s1558_s12 = smul.f32 0.00390625, %s3474_s11 }
 0x9ef   :  { %v2677_v8 = vstv %s1558_s12 }
 0x9f0   :  { %2679 = vst [vmem:[%s4585_s4 + $0x12] sm:$0x1] %v2677_v8 }
 0xa03   :  { %v2602_v33 = vpop.xlane.xlu1 %2601 }
 0xa04   :  { %v2606_v34 = vmul.f32 %v2602_v33, %v4126_v52 }
 0xa06   :  { %v2608_v36 = vadd.f32 1e-12, %v2606_v34 }
 0xa08   :  { %3580 = vrsqrt.f32 %v2608_v36  ;;  %vm2616_vm12 = vweird.f32 %v2608_v36 }
 0xa0e   :  { %v3581_v38 = vpop.eup %3580 }
 0xa0f   :  { %v2611_v4 = vmul.f32 %v3581_v38, %v2608_v36  ;;  %vm2617_vm7 = vweird.f32 %v3581_v38 }
 0xa10   :  { %vm2618_vm13 = vmor %vm2616_vm12, %vm2617_vm7 }
 0xa11   :  { %v2612_v44 = vmul.f32 %v3581_v38, %v2611_v4 }
 0xa13   :  { %v2613_v42 = vmul.f32 0.5, %v2612_v44 }
 0xa15   :  { %v2614_v43 = vsub.f32 1.5, %v2613_v42 }
 0xa17   :  { %v2615_v35 = vmul.f32 %v3581_v38, %v2614_v43 }
 0xa19   :  { %v2619_v3 = vsel %vm2618_vm13, %v3581_v38, %v2615_v35 }
 0xa21   :  { %v2605_v61 = vpop.xlane.xlu2 %2604 }
 0xa22   :  { %v2607_v14 = vmul.f32 %v2605_v61, %v4126_v52  ;;  %v2630_v52 = vmul.f32 %v2619_v3, %v2596_v18 }
 0xa24   :  { %v2609_v40 = vadd.f32 1e-12, %v2607_v14  ;;  %v2633_v55 = vmul.f32 %v3495_v53, %v2630_v52 }
 0xa26   :  { %3582 = vrsqrt.f32 %v2609_v40  ;;  %vm2626_vm15 = vweird.f32 %v2609_v40  ;;  %v2636_v0 = vadd.f32 %v3496_v60, %v2633_v55 }
 0xa2c   :  { %v3583_v48 = vpop.eup %3582 }
 0xa2d   :  { %v2621_v9 = vmul.f32 %v3583_v48, %v2609_v40  ;;  %vm2627_vm14 = vweird.f32 %v3583_v48 }
 0xa2e   :  { %vm2628_vm1 = vmor %vm2626_vm15, %vm2627_vm14 }
 0xa2f   :  { %v2622_v45 = vmul.f32 %v3583_v48, %v2621_v9 }
 0xa31   :  { %v2623_v27 = vmul.f32 0.5, %v2622_v45 }
 0xa33   :  { %v2624_v32 = vsub.f32 1.5, %v2623_v27 }
 0xa35   :  { %v2625_v59 = vmul.f32 %v3583_v48, %v2624_v32 }
 0xa37   :  { %v2629_v49 = vsel %vm2628_vm1, %v3583_v48, %v2625_v59 }
 0xa38   :  { %v2631_v63 = vmul.f32 %v2629_v49, %v2597_v24 }
 0xa3a   :  { %v2634_v51 = vmul.f32 %v3495_v53, %v2631_v63 }
 0xa3c   :  { %v2637_v1 = vadd.f32 %v3496_v60, %v2634_v51 }
 0xa3e   :  { %v2638_v22 = vpack.c.bf16 %v2637_v1, %v2636_v0 }
 0xa40   :  { %3318 = vmatmul.msk.bf16.vlgmr.msrb.gmra.mxu1 %vm1329_vm2, %v2638_v22 }
 0xabd   :  { %v2669_v11 = vpop.f32.mrf.mxu1 }
 0xabe   :  { %v2670_v39 = vadd.f32 %v3497_v37, %v2669_v11 }
 0xac0   :  { %2674 = vst [vmem:[%s4585_s4] sm:$0xff] %v2670_v39 }
 0xac5   :  { %v2671_v12 = vpop.f32.mrf.mxu1 }
 0xac6   :  { %v2672_v13 = vadd.f32 %v3497_v37, %v2671_v12 }
 0xac8   :  { %2675 = vst [vmem:[%s4585_s4 + $0x8] sm:$0xff] %v2672_v13 }

</bundles_post_ra>
